<compile_context>
chip_gen: v7x
topology: tpu7x:2x2x1
jax: 0.10.0
libtpu: 0.0.40
codegen_flags: <defaults>
</compile_context>

<pallas_src>
import math
import numpy as np
import jax
import jax.numpy as jnp
from jax.experimental import pallas as pl
from jax.experimental.pallas import tpu as pltpu  # noqa: F401  (TPU backend)

# ---------------- small config consistent with the module ----------------
IMAGE_SIZE = 16
PATCHES = 4
GRID_SIZE = IMAGE_SIZE // PATCHES            # 4
N_GRIDS = PATCHES ** 2                       # 16
N_CHANNELS = 3
DIM = 32
NUM_HEADS = 4
HEAD_DIM = DIM // NUM_HEADS                  # 8
NUM_CLASSES = 1
MLP_DIM = 4 * DIM                            # 128
SEQ = N_GRIDS + 1                            # 17 (class token + patches)
SEQ_PAD = 24                                 # padded to a multiple of 8 sublanes
IN_DIM = N_CHANNELS * GRID_SIZE ** 2         # 48
BATCH = 2
LANE = 128
LN_EPS = 1e-5
NEG_INF = -1e30


# ---------------------------------------------------------------------------
# In-kernel helpers
# ---------------------------------------------------------------------------
def _layer_norm(x, g, b):
    mu = jnp.mean(x, axis=-1, keepdims=True)
    var = jnp.mean(jnp.square(x - mu), axis=-1, keepdims=True)
    return (x - mu) * jax.lax.rsqrt(var + LN_EPS) * g + b


def _erf(z):
    # Abramowitz & Stegun 7.1.26, |err| < 1.5e-7 — exp/VPU only (no erf_p dep).
    a1, a2, a3, a4, a5 = 0.254829592, -0.284496736, 1.421413741, -1.453152027, 1.061405429
    p = 0.3275911
    za = jnp.abs(z)
    t = 1.0 / (1.0 + p * za)
    poly = ((((a5 * t + a4) * t + a3) * t + a2) * t + a1) * t
    y = 1.0 - poly * jnp.exp(-za * za)
    return jnp.where(z < 0.0, -y, y)


def _gelu(x):
    # Matches PyTorch nn.GELU default (exact erf form) to ~1e-7.
    return 0.5 * x * (1.0 + _erf(x * 0.7071067811865476))


# ---------------------------------------------------------------------------
# Fully fused SmallVit kernel (single grid-less call, everything in VMEM)
#   patches_ref: (B*SEQ_PAD, IN_DIM)   zero rows for class-token slot + padding
#   pe_ref:      (SEQ_PAD, DIM)        class_token+pos_emb[0] in row 0, zero pad
#   mask_ref:    (B, B*SEQ_PAD)        0 for own-batch valid keys, -1e30 else
#   wcol_ref:    (IN_DIM+MLP_DIM, DIM) [W_proj ; W2]
#   wdim_ref:    (DIM, 384)            [Wqkv | Wo | W1 | Wh_pad]
#   vec_ref:     (16, 128)             [g1,b1,bqkv,bo,g2,b2,bm1,bm2,bh] rows
#   o_ref:       (B, 128)              lane-dense padded logits
# ---------------------------------------------------------------------------
def _vit_fused_kernel(patches_ref, pe_ref, mask_ref, wcol_ref, wdim_ref, vec_ref,
                      o_ref):
    rows = patches_ref.shape[0]                 # B * SEQ_PAD (static)
    B = rows // SEQ_PAD

    # ---- unpack packed parameter slabs (static slices; XLU-only, tiny) ----
    w_proj = wcol_ref[0:IN_DIM, :]                                   # (48, 32)
    w2 = wcol_ref[IN_DIM:IN_DIM + MLP_DIM, :]                        # (128, 32)
    wqkv = wdim_ref[:, 0:3 * DIM]                                    # (32, 96)
    wo = wdim_ref[:, 3 * DIM:4 * DIM]                                # (32, 32)
    w1 = wdim_ref[:, 4 * DIM:4 * DIM + MLP_DIM]                      # (32, 128)
    wh = wdim_ref[:, 4 * DIM + MLP_DIM:4 * DIM + 2 * MLP_DIM]        # (32, 128)
    g1 = vec_ref[0:1, 0:DIM]
    b1 = vec_ref[1:2, 0:DIM]
    bqkv = vec_ref[2:3, 0:3 * DIM]
    bo = vec_ref[3:4, 0:DIM]
    g2 = vec_ref[4:5, 0:DIM]
    b2 = vec_ref[5:6, 0:DIM]
    bm1 = vec_ref[6:7, 0:MLP_DIM]
    bm2 = vec_ref[7:8, 0:DIM]
    bh = vec_ref[8:9, :]                                             # (1, 128)

    # ---- pixel projection (no bias) + class token / positional embeddings ----
    # padded patch rows are zero, so zero-padded pos-emb rows keep the add exact.
    x = jnp.dot(patches_ref[...], w_proj,
                preferred_element_type=jnp.float32)                  # (B*S, DIM)
    x = (x.reshape(B, SEQ_PAD, DIM) + pe_ref[...][None]).reshape(rows, DIM)

    # ---- multi-head self attention (pre-LN); queries = class-token rows only ----
    h = _layer_norm(x, g1, b1)                                       # (B*S, DIM)
    qkv = jnp.dot(h, wqkv, preferred_element_type=jnp.float32) + bqkv  # (B*S, 96)

    def cls_rows(a):  # gather row 0 of each sequence (rows b*SEQ_PAD, 8-aligned)
        return jnp.concatenate(
            [a[b * SEQ_PAD:b * SEQ_PAD + 1, :] for b in range(B)], axis=0)

    qkv_cls = cls_rows(qkv)                                          # (B, 96)
    x_cls = cls_rows(x)                                              # (B, DIM)

    scale = 1.0 / math.sqrt(HEAD_DIM)
    mask = mask_ref[...]                                             # (B, B*S)
    head_outs = []
    for hh in range(NUM_HEADS):        # static unroll; 8-lane slices (XLU slot)
        q = qkv_cls[:, hh * HEAD_DIM:(hh + 1) * HEAD_DIM] * scale            # (B, 8)
        k = qkv[:, DIM + hh * HEAD_DIM:DIM + (hh + 1) * HEAD_DIM]            # (B*S, 8)
        v = qkv[:, 2 * DIM + hh * HEAD_DIM:2 * DIM + (hh + 1) * HEAD_DIM]    # (B*S, 8)
        s = jax.lax.dot_general(q, k, (((1,), (1,)), ((), ())),
                                preferred_element_type=jnp.float32) + mask   # (B, B*S)
        s = s - jnp.max(s, axis=-1, keepdims=True)
        p = jnp.exp(s)
        p = p * pl.reciprocal(jnp.sum(p, axis=-1, keepdims=True), approx=False)
        head_outs.append(jnp.dot(p, v, preferred_element_type=jnp.float32))  # (B, 8)

    attn = jnp.dot(jnp.concatenate(head_outs, axis=-1), wo,
                   preferred_element_type=jnp.float32) + bo          # (B, DIM)
    # dropout(p=0.05) is identity at inference
    x1 = x_cls + attn

    # ---- MLP (pre-LN) on class-token rows only ----
    h2 = _layer_norm(x1, g2, b2)
    m = _gelu(jnp.dot(h2, w1, preferred_element_type=jnp.float32) + bm1)
    m = jnp.dot(m, w2, preferred_element_type=jnp.float32) + bm2
    x2 = x1 + m                                                      # (B, DIM)

    # ---- classification head (lane-dense padded output) ----
    o_ref[...] = jnp.dot(x2, wh, preferred_element_type=jnp.float32) + bh


# ---------------------------------------------------------------------------
# Parameter init (deterministic, shapes dictated by the module's __init__)
# ---------------------------------------------------------------------------
def init_params(key):
    ks = jax.random.split(key, 12)

    def nrm(k, shape, std=0.05):
        return (std * jax.random.normal(k, shape)).astype(jnp.float32)

    params = {
        # nn.Linear(IN_DIM, DIM, bias=False), stored as [in, out]
        "w_proj": nrm(ks[0], (IN_DIM, DIM)),
        "class_token": nrm(ks[1], (1, DIM)),
        "pos_emb": nrm(ks[2], (SEQ, DIM)),
        # head: nn.Linear(DIM, NUM_CLASSES)
        "w_head": nrm(ks[3], (DIM, NUM_CLASSES)),
        "b_head": jnp.zeros((1, NUM_CLASSES), jnp.float32),
    }
    # SelfAttentionBlock params (pre-LN transformer block), stored [in, out]
    params["block"] = [
        jnp.ones((1, DIM), jnp.float32), jnp.zeros((1, DIM), jnp.float32),   # LN1
        nrm(ks[4], (DIM, DIM)), jnp.zeros((1, DIM), jnp.float32),            # Wq, bq
        nrm(ks[5], (DIM, DIM)), jnp.zeros((1, DIM), jnp.float32),            # Wk, bk
        nrm(ks[6], (DIM, DIM)), jnp.zeros((1, DIM), jnp.float32),            # Wv, bv
        nrm(ks[7], (DIM, DIM)), jnp.zeros((1, DIM), jnp.float32),            # Wo, bo
        jnp.ones((1, DIM), jnp.float32), jnp.zeros((1, DIM), jnp.float32),   # LN2
        nrm(ks[8], (DIM, MLP_DIM)), jnp.zeros((1, MLP_DIM), jnp.float32),    # W1, b1
        nrm(ks[9], (MLP_DIM, DIM)), jnp.zeros((1, DIM), jnp.float32),        # W2, b2
    ]
    return params


# ---------------------------------------------------------------------------
# One-time host-side packing of the ~22 tiny parameter tensors into 4 slabs
# ---------------------------------------------------------------------------
def pack_params(params):
    (g1, b1, wq, bq, wk, bk, wv, bv, wo, bo,
     g2, b2, w1, bm1, w2, bm2) = params["block"]

    def row(v):   # pad a (1, n) vector to a lane-dense (1, 128) row
        return jnp.pad(v, ((0, 0), (0, LANE - v.shape[1])))

    wqkv = jnp.concatenate([wq, wk, wv], axis=1)                      # (32, 96)
    bqkv = jnp.concatenate([bq, bk, bv], axis=1)                      # (1, 96)
    wh_pad = jnp.pad(params["w_head"], ((0, 0), (0, LANE - NUM_CLASSES)))
    bh_pad = row(params["b_head"])

    w_dim = jnp.concatenate([wqkv, wo, w1, wh_pad], axis=1)           # (32, 384)
    w_col32 = jnp.concatenate([params["w_proj"], w2], axis=0)         # (176, 32)

    vec = jnp.concatenate([row(g1), row(b1), row(bqkv), row(bo),
                           row(g2), row(b2), row(bm1), row(bm2), bh_pad], axis=0)
    vec = jnp.pad(vec, ((0, 16 - vec.shape[0]), (0, 0)))              # (16, 128)

    pe = jnp.concatenate(
        [params["class_token"] + params["pos_emb"][0:1], params["pos_emb"][1:]],
        axis=0)                                                       # (SEQ, DIM)
    pe = jnp.pad(pe, ((0, SEQ_PAD - SEQ), (0, 0)))                    # (SEQ_PAD, DIM)

    return {"pe": pe, "w_col32": w_col32, "w_dim": w_dim, "vec": vec}


# ---------------------------------------------------------------------------
# Full SmallVit forward: one fused, grid-less pallas_call
# ---------------------------------------------------------------------------
def small_vit_forward(x_img, packed):
    B = x_img.shape[0]

    # Patch extraction as a pure reshape/transpose (exactly equivalent to the
    # module's x[:, :, x_index, y_index].transpose(2,1).reshape(...) gather).
    p = x_img.reshape(B, N_CHANNELS, PATCHES, GRID_SIZE, PATCHES, GRID_SIZE)
    p = jnp.transpose(p, (0, 2, 4, 1, 3, 5)).reshape(B, N_GRIDS, IN_DIM)
    # Row 0 of each sequence = class-token slot (zero patch -> zero projection);
    # rows SEQ..SEQ_PAD-1 = padding (masked as keys).
    p = jnp.pad(p, ((0, 0), (1, SEQ_PAD - 1 - N_GRIDS), (0, 0)))
    patches2d = p.reshape(B * SEQ_PAD, IN_DIM)                        # (B*S, 48)

    # Combined batch / padding mask (trace-time numpy constant):
    # query row b may only attend keys of its own sequence, positions < SEQ.
    mask_np = np.full((B, B * SEQ_PAD), NEG_INF, np.float32)
    for b in range(B):
        mask_np[b, b * SEQ_PAD:b * SEQ_PAD + SEQ] = 0.0
    mask = jnp.asarray(mask_np)

    logits_pad = pl.pallas_call(
        _vit_fused_kernel,
        out_shape=jax.ShapeDtypeStruct((B, LANE), jnp.float32),
    )(patches2d, packed["pe"], mask,
      packed["w_col32"], packed["w_dim"], packed["vec"])

    return logits_pad[:, :NUM_CLASSES]                                # (B, 1)


if __name__ == "__main__":
    key = jax.random.PRNGKey(0)
    kx, kp = jax.random.split(key)
    x = jax.random.normal(
        kx, (BATCH, N_CHANNELS, IMAGE_SIZE, IMAGE_SIZE), dtype=jnp.float32)
    params = init_params(kp)
    packed = pack_params(params)

    fwd = jax.jit(small_vit_forward)
    out = fwd(x, packed)
    out = jax.block_until_ready(out)
    assert out.shape == (BATCH, NUM_CLASSES), out.shape
    assert bool(jnp.all(jnp.isfinite(out)))
    print("KERNEL_OK")
</pallas_src>

<mosaic_0001>
module attributes {stable_mosaic.version = 11 : i64} {
  func.func @_vit_fused_kernel(%arg0: memref<48x48xf32, #tpu.memory_space<vmem>>, %arg1: memref<24x32xf32, #tpu.memory_space<vmem>>, %arg2: memref<2x48xf32, #tpu.memory_space<vmem>>, %arg3: memref<176x32xf32, #tpu.memory_space<vmem>>, %arg4: memref<32x384xf32, #tpu.memory_space<vmem>>, %arg5: memref<16x128xf32, #tpu.memory_space<vmem>>, %arg6: memref<2x128xf32, #tpu.memory_space<vmem>>) attributes {dimension_semantics = [], scalar_prefetch = 0 : i64, scratch_operands = 0 : i64, tpu.core_type = #tpu.core_type<tc>} {
    %c0 = arith.constant 0 : index
    %c0_0 = arith.constant 0 : index
    %0 = vector.load %arg3[%c0, %c0_0] : memref<176x32xf32, #tpu.memory_space<vmem>>, vector<48x32xf32>
    %c48 = arith.constant 48 : index
    %c0_1 = arith.constant 0 : index
    %1 = vector.load %arg3[%c48, %c0_1] : memref<176x32xf32, #tpu.memory_space<vmem>>, vector<128x32xf32>
    %c0_2 = arith.constant 0 : index
    %c0_3 = arith.constant 0 : index
    %2 = vector.load %arg4[%c0_2, %c0_3] : memref<32x384xf32, #tpu.memory_space<vmem>>, vector<32x96xf32>
    %c0_4 = arith.constant 0 : index
    %c96 = arith.constant 96 : index
    %3 = vector.load %arg4[%c0_4, %c96] : memref<32x384xf32, #tpu.memory_space<vmem>>, vector<32x32xf32>
    %c0_5 = arith.constant 0 : index
    %c128 = arith.constant 128 : index
    %4 = vector.load %arg4[%c0_5, %c128] : memref<32x384xf32, #tpu.memory_space<vmem>>, vector<32x128xf32>
    %c0_6 = arith.constant 0 : index
    %c256 = arith.constant 256 : index
    %5 = vector.load %arg4[%c0_6, %c256] : memref<32x384xf32, #tpu.memory_space<vmem>>, vector<32x128xf32>
    %c0_7 = arith.constant 0 : index
    %c0_8 = arith.constant 0 : index
    %6 = vector.load %arg5[%c0_7, %c0_8] : memref<16x128xf32, #tpu.memory_space<vmem>>, vector<1x32xf32>
    %c1 = arith.constant 1 : index
    %c0_9 = arith.constant 0 : index
    %7 = vector.load %arg5[%c1, %c0_9] : memref<16x128xf32, #tpu.memory_space<vmem>>, vector<1x32xf32>
    %c2 = arith.constant 2 : index
    %c0_10 = arith.constant 0 : index
    %8 = vector.load %arg5[%c2, %c0_10] : memref<16x128xf32, #tpu.memory_space<vmem>>, vector<1x96xf32>
    %c3 = arith.constant 3 : index
    %c0_11 = arith.constant 0 : index
    %9 = vector.load %arg5[%c3, %c0_11] : memref<16x128xf32, #tpu.memory_space<vmem>>, vector<1x32xf32>
    %c4 = arith.constant 4 : index
    %c0_12 = arith.constant 0 : index
    %10 = vector.load %arg5[%c4, %c0_12] : memref<16x128xf32, #tpu.memory_space<vmem>>, vector<1x32xf32>
    %c5 = arith.constant 5 : index
    %c0_13 = arith.constant 0 : index
    %11 = vector.load %arg5[%c5, %c0_13] : memref<16x128xf32, #tpu.memory_space<vmem>>, vector<1x32xf32>
    %c6 = arith.constant 6 : index
    %c0_14 = arith.constant 0 : index
    %12 = vector.load %arg5[%c6, %c0_14] : memref<16x128xf32, #tpu.memory_space<vmem>>, vector<1x128xf32>
    %c7 = arith.constant 7 : index
    %c0_15 = arith.constant 0 : index
    %13 = vector.load %arg5[%c7, %c0_15] : memref<16x128xf32, #tpu.memory_space<vmem>>, vector<1x32xf32>
    %c8 = arith.constant 8 : index
    %c0_16 = arith.constant 0 : index
    %14 = vector.load %arg5[%c8, %c0_16] : memref<16x128xf32, #tpu.memory_space<vmem>>, vector<1x128xf32>
    %c0_17 = arith.constant 0 : index
    %c0_18 = arith.constant 0 : index
    %15 = vector.load %arg0[%c0_17, %c0_18] : memref<48x48xf32, #tpu.memory_space<vmem>>, vector<48x48xf32>
    %cst = arith.constant dense<0.000000e+00> : vector<48x32xf32>
    %16 = tpu.matmul %15, %0, %cst {dimension_numbers = #tpu.dot_dimension_numbers<[1], [0], [0], [1], [0, 0, 1, 1], [], []>} : vector<48x48xf32>, vector<48x32xf32>, vector<48x32xf32> -> vector<48x32xf32>
    %17 = vector.shape_cast %16 : vector<48x32xf32> to vector<2x24x32xf32>
    %c0_19 = arith.constant 0 : index
    %c0_20 = arith.constant 0 : index
    %18 = vector.load %arg1[%c0_19, %c0_20] : memref<24x32xf32, #tpu.memory_space<vmem>>, vector<24x32xf32>
    %19 = vector.shape_cast %18 : vector<24x32xf32> to vector<1x24x32xf32>
    %20 = vector.broadcast %19 : vector<1x24x32xf32> to vector<2x24x32xf32>
    %21 = arith.addf %17, %20 : vector<2x24x32xf32>
    %22 = vector.shape_cast %21 : vector<2x24x32xf32> to vector<48x32xf32>
    %cst_21 = arith.constant dense<0.000000e+00> : vector<48xf32>
    %23 = vector.multi_reduction <add>, %22, %cst_21 [1] : vector<48x32xf32> to vector<48xf32>
    %24 = vector.shape_cast %23 : vector<48xf32> to vector<48x1xf32>
    %cst_22 = arith.constant 3.200000e+01 : f32
    %25 = vector.broadcast %cst_22 : f32 to vector<48x1xf32>
    %26 = arith.divf %24, %25 : vector<48x1xf32>
    %27 = vector.broadcast %26 : vector<48x1xf32> to vector<48x32xf32>
    %28 = arith.subf %22, %27 : vector<48x32xf32>
    %29 = arith.mulf %28, %28 : vector<48x32xf32>
    %cst_23 = arith.constant dense<0.000000e+00> : vector<48xf32>
    %30 = vector.multi_reduction <add>, %29, %cst_23 [1] : vector<48x32xf32> to vector<48xf32>
    %31 = vector.shape_cast %30 : vector<48xf32> to vector<48x1xf32>
    %cst_24 = arith.constant 3.200000e+01 : f32
    %32 = vector.broadcast %cst_24 : f32 to vector<48x1xf32>
    %33 = arith.divf %31, %32 : vector<48x1xf32>
    %34 = vector.broadcast %26 : vector<48x1xf32> to vector<48x32xf32>
    %35 = arith.subf %22, %34 : vector<48x32xf32>
    %cst_25 = arith.constant 9.99999974E-6 : f32
    %36 = vector.broadcast %cst_25 : f32 to vector<48x1xf32>
    %37 = arith.addf %33, %36 : vector<48x1xf32>
    %38 = math.rsqrt %37 : vector<48x1xf32>
    %39 = vector.broadcast %38 : vector<48x1xf32> to vector<48x32xf32>
    %40 = arith.mulf %35, %39 : vector<48x32xf32>
    %41 = vector.broadcast %6 : vector<1x32xf32> to vector<48x32xf32>
    %42 = arith.mulf %40, %41 : vector<48x32xf32>
    %43 = vector.broadcast %7 : vector<1x32xf32> to vector<48x32xf32>
    %44 = arith.addf %42, %43 : vector<48x32xf32>
    %cst_26 = arith.constant dense<0.000000e+00> : vector<48x96xf32>
    %45 = tpu.matmul %44, %2, %cst_26 {dimension_numbers = #tpu.dot_dimension_numbers<[1], [0], [0], [1], [0, 0, 1, 1], [], []>} : vector<48x32xf32>, vector<32x96xf32>, vector<48x96xf32> -> vector<48x96xf32>
    %46 = vector.broadcast %8 : vector<1x96xf32> to vector<48x96xf32>
    %47 = arith.addf %45, %46 : vector<48x96xf32>
    %48 = vector.extract_strided_slice %47 {offsets = [0, 0], sizes = [1, 96], strides = [1, 1]} : vector<48x96xf32> to vector<1x96xf32>
    %49 = vector.extract_strided_slice %47 {offsets = [24, 0], sizes = [1, 96], strides = [1, 1]} : vector<48x96xf32> to vector<1x96xf32>
    %50 = tpu.concatenate %48, %49 in 0 : vector<1x96xf32>, vector<1x96xf32> -> vector<2x96xf32>
    %51 = vector.extract_strided_slice %22 {offsets = [0, 0], sizes = [1, 32], strides = [1, 1]} : vector<48x32xf32> to vector<1x32xf32>
    %52 = vector.extract_strided_slice %22 {offsets = [24, 0], sizes = [1, 32], strides = [1, 1]} : vector<48x32xf32> to vector<1x32xf32>
    %53 = tpu.concatenate %51, %52 in 0 : vector<1x32xf32>, vector<1x32xf32> -> vector<2x32xf32>
    %c0_27 = arith.constant 0 : index
    %c0_28 = arith.constant 0 : index
    %54 = vector.load %arg2[%c0_27, %c0_28] : memref<2x48xf32, #tpu.memory_space<vmem>>, vector<2x48xf32>
    %55 = vector.extract_strided_slice %50 {offsets = [0, 0], sizes = [2, 8], strides = [1, 1]} : vector<2x96xf32> to vector<2x8xf32>
    %cst_29 = arith.constant 0.353553385 : f32
    %56 = vector.broadcast %cst_29 : f32 to vector<2x8xf32>
    %57 = arith.mulf %55, %56 : vector<2x8xf32>
    %58 = vector.extract_strided_slice %47 {offsets = [0, 32], sizes = [48, 8], strides = [1, 1]} : vector<48x96xf32> to vector<48x8xf32>
    %59 = vector.extract_strided_slice %47 {offsets = [0, 64], sizes = [48, 8], strides = [1, 1]} : vector<48x96xf32> to vector<48x8xf32>
    %cst_30 = arith.constant dense<0.000000e+00> : vector<2x48xf32>
    %60 = tpu.matmul %57, %58, %cst_30 {dimension_numbers = #tpu.dot_dimension_numbers<[1], [1], [0], [0], [0, 0, 1, 0], [], []>} : vector<2x8xf32>, vector<48x8xf32>, vector<2x48xf32> -> vector<2x48xf32>
    %61 = arith.addf %60, %54 : vector<2x48xf32>
    %cst_31 = arith.constant dense<0xFF800000> : vector<2xf32>
    %62 = vector.multi_reduction <maximumf>, %61, %cst_31 [1] : vector<2x48xf32> to vector<2xf32>
    %63 = vector.shape_cast %62 : vector<2xf32> to vector<2x1xf32>
    %64 = vector.broadcast %63 : vector<2x1xf32> to vector<2x48xf32>
    %65 = arith.subf %61, %64 : vector<2x48xf32>
    %66 = math.exp %65 : vector<2x48xf32>
    %cst_32 = arith.constant dense<0.000000e+00> : vector<2xf32>
    %67 = vector.multi_reduction <add>, %66, %cst_32 [1] : vector<2x48xf32> to vector<2xf32>
    %68 = vector.shape_cast %67 : vector<2xf32> to vector<2x1xf32>
    %69 = tpu.reciprocal %68 : vector<2x1xf32> -> vector<2x1xf32>
    %70 = vector.broadcast %69 : vector<2x1xf32> to vector<2x48xf32>
    %71 = arith.mulf %66, %70 : vector<2x48xf32>
    %cst_33 = arith.constant dense<0.000000e+00> : vector<2x8xf32>
    %72 = tpu.matmul %71, %59, %cst_33 {dimension_numbers = #tpu.dot_dimension_numbers<[1], [0], [0], [1], [0, 0, 1, 1], [], []>} : vector<2x48xf32>, vector<48x8xf32>, vector<2x8xf32> -> vector<2x8xf32>
    %73 = vector.extract_strided_slice %50 {offsets = [0, 8], sizes = [2, 8], strides = [1, 1]} : vector<2x96xf32> to vector<2x8xf32>
    %cst_34 = arith.constant 0.353553385 : f32
    %74 = vector.broadcast %cst_34 : f32 to vector<2x8xf32>
    %75 = arith.mulf %73, %74 : vector<2x8xf32>
    %76 = vector.extract_strided_slice %47 {offsets = [0, 40], sizes = [48, 8], strides = [1, 1]} : vector<48x96xf32> to vector<48x8xf32>
    %77 = vector.extract_strided_slice %47 {offsets = [0, 72], sizes = [48, 8], strides = [1, 1]} : vector<48x96xf32> to vector<48x8xf32>
    %cst_35 = arith.constant dense<0.000000e+00> : vector<2x48xf32>
    %78 = tpu.matmul %75, %76, %cst_35 {dimension_numbers = #tpu.dot_dimension_numbers<[1], [1], [0], [0], [0, 0, 1, 0], [], []>} : vector<2x8xf32>, vector<48x8xf32>, vector<2x48xf32> -> vector<2x48xf32>
    %79 = arith.addf %78, %54 : vector<2x48xf32>
    %cst_36 = arith.constant dense<0xFF800000> : vector<2xf32>
    %80 = vector.multi_reduction <maximumf>, %79, %cst_36 [1] : vector<2x48xf32> to vector<2xf32>
    %81 = vector.shape_cast %80 : vector<2xf32> to vector<2x1xf32>
    %82 = vector.broadcast %81 : vector<2x1xf32> to vector<2x48xf32>
    %83 = arith.subf %79, %82 : vector<2x48xf32>
    %84 = math.exp %83 : vector<2x48xf32>
    %cst_37 = arith.constant dense<0.000000e+00> : vector<2xf32>
    %85 = vector.multi_reduction <add>, %84, %cst_37 [1] : vector<2x48xf32> to vector<2xf32>
    %86 = vector.shape_cast %85 : vector<2xf32> to vector<2x1xf32>
    %87 = tpu.reciprocal %86 : vector<2x1xf32> -> vector<2x1xf32>
    %88 = vector.broadcast %87 : vector<2x1xf32> to vector<2x48xf32>
    %89 = arith.mulf %84, %88 : vector<2x48xf32>
    %cst_38 = arith.constant dense<0.000000e+00> : vector<2x8xf32>
    %90 = tpu.matmul %89, %77, %cst_38 {dimension_numbers = #tpu.dot_dimension_numbers<[1], [0], [0], [1], [0, 0, 1, 1], [], []>} : vector<2x48xf32>, vector<48x8xf32>, vector<2x8xf32> -> vector<2x8xf32>
    %91 = vector.extract_strided_slice %50 {offsets = [0, 16], sizes = [2, 8], strides = [1, 1]} : vector<2x96xf32> to vector<2x8xf32>
    %cst_39 = arith.constant 0.353553385 : f32
    %92 = vector.broadcast %cst_39 : f32 to vector<2x8xf32>
    %93 = arith.mulf %91, %92 : vector<2x8xf32>
    %94 = vector.extract_strided_slice %47 {offsets = [0, 48], sizes = [48, 8], strides = [1, 1]} : vector<48x96xf32> to vector<48x8xf32>
    %95 = vector.extract_strided_slice %47 {offsets = [0, 80], sizes = [48, 8], strides = [1, 1]} : vector<48x96xf32> to vector<48x8xf32>
    %cst_40 = arith.constant dense<0.000000e+00> : vector<2x48xf32>
    %96 = tpu.matmul %93, %94, %cst_40 {dimension_numbers = #tpu.dot_dimension_numbers<[1], [1], [0], [0], [0, 0, 1, 0], [], []>} : vector<2x8xf32>, vector<48x8xf32>, vector<2x48xf32> -> vector<2x48xf32>
    %97 = arith.addf %96, %54 : vector<2x48xf32>
    %cst_41 = arith.constant dense<0xFF800000> : vector<2xf32>
    %98 = vector.multi_reduction <maximumf>, %97, %cst_41 [1] : vector<2x48xf32> to vector<2xf32>
    %99 = vector.shape_cast %98 : vector<2xf32> to vector<2x1xf32>
    %100 = vector.broadcast %99 : vector<2x1xf32> to vector<2x48xf32>
    %101 = arith.subf %97, %100 : vector<2x48xf32>
    %102 = math.exp %101 : vector<2x48xf32>
    %cst_42 = arith.constant dense<0.000000e+00> : vector<2xf32>
    %103 = vector.multi_reduction <add>, %102, %cst_42 [1] : vector<2x48xf32> to vector<2xf32>
    %104 = vector.shape_cast %103 : vector<2xf32> to vector<2x1xf32>
    %105 = tpu.reciprocal %104 : vector<2x1xf32> -> vector<2x1xf32>
    %106 = vector.broadcast %105 : vector<2x1xf32> to vector<2x48xf32>
    %107 = arith.mulf %102, %106 : vector<2x48xf32>
    %cst_43 = arith.constant dense<0.000000e+00> : vector<2x8xf32>
    %108 = tpu.matmul %107, %95, %cst_43 {dimension_numbers = #tpu.dot_dimension_numbers<[1], [0], [0], [1], [0, 0, 1, 1], [], []>} : vector<2x48xf32>, vector<48x8xf32>, vector<2x8xf32> -> vector<2x8xf32>
    %109 = vector.extract_strided_slice %50 {offsets = [0, 24], sizes = [2, 8], strides = [1, 1]} : vector<2x96xf32> to vector<2x8xf32>
    %cst_44 = arith.constant 0.353553385 : f32
    %110 = vector.broadcast %cst_44 : f32 to vector<2x8xf32>
    %111 = arith.mulf %109, %110 : vector<2x8xf32>
    %112 = vector.extract_strided_slice %47 {offsets = [0, 56], sizes = [48, 8], strides = [1, 1]} : vector<48x96xf32> to vector<48x8xf32>
    %113 = vector.extract_strided_slice %47 {offsets = [0, 88], sizes = [48, 8], strides = [1, 1]} : vector<48x96xf32> to vector<48x8xf32>
    %cst_45 = arith.constant dense<0.000000e+00> : vector<2x48xf32>
    %114 = tpu.matmul %111, %112, %cst_45 {dimension_numbers = #tpu.dot_dimension_numbers<[1], [1], [0], [0], [0, 0, 1, 0], [], []>} : vector<2x8xf32>, vector<48x8xf32>, vector<2x48xf32> -> vector<2x48xf32>
    %115 = arith.addf %114, %54 : vector<2x48xf32>
    %cst_46 = arith.constant dense<0xFF800000> : vector<2xf32>
    %116 = vector.multi_reduction <maximumf>, %115, %cst_46 [1] : vector<2x48xf32> to vector<2xf32>
    %117 = vector.shape_cast %116 : vector<2xf32> to vector<2x1xf32>
    %118 = vector.broadcast %117 : vector<2x1xf32> to vector<2x48xf32>
    %119 = arith.subf %115, %118 : vector<2x48xf32>
    %120 = math.exp %119 : vector<2x48xf32>
    %cst_47 = arith.constant dense<0.000000e+00> : vector<2xf32>
    %121 = vector.multi_reduction <add>, %120, %cst_47 [1] : vector<2x48xf32> to vector<2xf32>
    %122 = vector.shape_cast %121 : vector<2xf32> to vector<2x1xf32>
    %123 = tpu.reciprocal %122 : vector<2x1xf32> -> vector<2x1xf32>
    %124 = vector.broadcast %123 : vector<2x1xf32> to vector<2x48xf32>
    %125 = arith.mulf %120, %124 : vector<2x48xf32>
    %cst_48 = arith.constant dense<0.000000e+00> : vector<2x8xf32>
    %126 = tpu.matmul %125, %113, %cst_48 {dimension_numbers = #tpu.dot_dimension_numbers<[1], [0], [0], [1], [0, 0, 1, 1], [], []>} : vector<2x48xf32>, vector<48x8xf32>, vector<2x8xf32> -> vector<2x8xf32>
    %127 = tpu.concatenate %72, %90, %108, %126 in 1 : vector<2x8xf32>, vector<2x8xf32>, vector<2x8xf32>, vector<2x8xf32> -> vector<2x32xf32>
    %cst_49 = arith.constant dense<0.000000e+00> : vector<2x32xf32>
    %128 = tpu.matmul %127, %3, %cst_49 {dimension_numbers = #tpu.dot_dimension_numbers<[1], [0], [0], [1], [0, 0, 1, 1], [], []>} : vector<2x32xf32>, vector<32x32xf32>, vector<2x32xf32> -> vector<2x32xf32>
    %129 = vector.broadcast %9 : vector<1x32xf32> to vector<2x32xf32>
    %130 = arith.addf %128, %129 : vector<2x32xf32>
    %131 = arith.addf %53, %130 : vector<2x32xf32>
    %cst_50 = arith.constant dense<0.000000e+00> : vector<2xf32>
    %132 = vector.multi_reduction <add>, %131, %cst_50 [1] : vector<2x32xf32> to vector<2xf32>
    %133 = vector.shape_cast %132 : vector<2xf32> to vector<2x1xf32>
    %cst_51 = arith.constant 3.200000e+01 : f32
    %134 = vector.broadcast %cst_51 : f32 to vector<2x1xf32>
    %135 = arith.divf %133, %134 : vector<2x1xf32>
    %136 = vector.broadcast %135 : vector<2x1xf32> to vector<2x32xf32>
    %137 = arith.subf %131, %136 : vector<2x32xf32>
    %138 = arith.mulf %137, %137 : vector<2x32xf32>
    %cst_52 = arith.constant dense<0.000000e+00> : vector<2xf32>
    %139 = vector.multi_reduction <add>, %138, %cst_52 [1] : vector<2x32xf32> to vector<2xf32>
    %140 = vector.shape_cast %139 : vector<2xf32> to vector<2x1xf32>
    %cst_53 = arith.constant 3.200000e+01 : f32
    %141 = vector.broadcast %cst_53 : f32 to vector<2x1xf32>
    %142 = arith.divf %140, %141 : vector<2x1xf32>
    %143 = vector.broadcast %135 : vector<2x1xf32> to vector<2x32xf32>
    %144 = arith.subf %131, %143 : vector<2x32xf32>
    %cst_54 = arith.constant 9.99999974E-6 : f32
    %145 = vector.broadcast %cst_54 : f32 to vector<2x1xf32>
    %146 = arith.addf %142, %145 : vector<2x1xf32>
    %147 = math.rsqrt %146 : vector<2x1xf32>
    %148 = vector.broadcast %147 : vector<2x1xf32> to vector<2x32xf32>
    %149 = arith.mulf %144, %148 : vector<2x32xf32>
    %150 = vector.broadcast %10 : vector<1x32xf32> to vector<2x32xf32>
    %151 = arith.mulf %149, %150 : vector<2x32xf32>
    %152 = vector.broadcast %11 : vector<1x32xf32> to vector<2x32xf32>
    %153 = arith.addf %151, %152 : vector<2x32xf32>
    %cst_55 = arith.constant dense<0.000000e+00> : vector<2x128xf32>
    %154 = tpu.matmul %153, %4, %cst_55 {dimension_numbers = #tpu.dot_dimension_numbers<[1], [0], [0], [1], [0, 0, 1, 1], [], []>} : vector<2x32xf32>, vector<32x128xf32>, vector<2x128xf32> -> vector<2x128xf32>
    %155 = vector.broadcast %12 : vector<1x128xf32> to vector<2x128xf32>
    %156 = arith.addf %154, %155 : vector<2x128xf32>
    %cst_56 = arith.constant 5.000000e-01 : f32
    %157 = vector.broadcast %cst_56 : f32 to vector<2x128xf32>
    %158 = arith.mulf %157, %156 : vector<2x128xf32>
    %cst_57 = arith.constant 0.707106769 : f32
    %159 = vector.broadcast %cst_57 : f32 to vector<2x128xf32>
    %160 = arith.mulf %156, %159 : vector<2x128xf32>
    %161 = math.absf %160 : vector<2x128xf32>
    %cst_58 = arith.constant 0.327591091 : f32
    %162 = vector.broadcast %cst_58 : f32 to vector<2x128xf32>
    %163 = arith.mulf %162, %161 : vector<2x128xf32>
    %cst_59 = arith.constant 1.000000e+00 : f32
    %164 = vector.broadcast %cst_59 : f32 to vector<2x128xf32>
    %165 = arith.addf %164, %163 : vector<2x128xf32>
    %cst_60 = arith.constant 1.000000e+00 : f32
    %166 = vector.broadcast %cst_60 : f32 to vector<2x128xf32>
    %167 = arith.divf %166, %165 : vector<2x128xf32>
    %cst_61 = arith.constant 1.06140542 : f32
    %168 = vector.broadcast %cst_61 : f32 to vector<2x128xf32>
    %169 = arith.mulf %168, %167 : vector<2x128xf32>
    %cst_62 = arith.constant -1.45315206 : f32
    %170 = vector.broadcast %cst_62 : f32 to vector<2x128xf32>
    %171 = arith.addf %169, %170 : vector<2x128xf32>
    %172 = arith.mulf %171, %167 : vector<2x128xf32>
    %cst_63 = arith.constant 1.42141378 : f32
    %173 = vector.broadcast %cst_63 : f32 to vector<2x128xf32>
    %174 = arith.addf %172, %173 : vector<2x128xf32>
    %175 = arith.mulf %174, %167 : vector<2x128xf32>
    %cst_64 = arith.constant -0.284496725 : f32
    %176 = vector.broadcast %cst_64 : f32 to vector<2x128xf32>
    %177 = arith.addf %175, %176 : vector<2x128xf32>
    %178 = arith.mulf %177, %167 : vector<2x128xf32>
    %cst_65 = arith.constant 0.254829586 : f32
    %179 = vector.broadcast %cst_65 : f32 to vector<2x128xf32>
    %180 = arith.addf %178, %179 : vector<2x128xf32>
    %181 = arith.mulf %180, %167 : vector<2x128xf32>
    %cst_66 = arith.constant 0.000000e+00 : f32
    %182 = vector.broadcast %cst_66 : f32 to vector<2x128xf32>
    %183 = arith.subf %182, %161 : vector<2x128xf32>
    %184 = arith.mulf %183, %161 : vector<2x128xf32>
    %185 = math.exp %184 : vector<2x128xf32>
    %186 = arith.mulf %181, %185 : vector<2x128xf32>
    %cst_67 = arith.constant 1.000000e+00 : f32
    %187 = vector.broadcast %cst_67 : f32 to vector<2x128xf32>
    %188 = arith.subf %187, %186 : vector<2x128xf32>
    %cst_68 = arith.constant 0.000000e+00 : f32
    %189 = vector.broadcast %cst_68 : f32 to vector<2x128xf32>
    %190 = arith.cmpf olt, %160, %189 : vector<2x128xf32>
    %cst_69 = arith.constant 0.000000e+00 : f32
    %191 = vector.broadcast %cst_69 : f32 to vector<2x128xf32>
    %192 = arith.subf %191, %188 : vector<2x128xf32>
    %193 = arith.select %190, %192, %188 : vector<2x128xi1>, vector<2x128xf32>
    %cst_70 = arith.constant 1.000000e+00 : f32
    %194 = vector.broadcast %cst_70 : f32 to vector<2x128xf32>
    %195 = arith.addf %194, %193 : vector<2x128xf32>
    %196 = arith.mulf %158, %195 : vector<2x128xf32>
    %cst_71 = arith.constant dense<0.000000e+00> : vector<2x32xf32>
    %197 = tpu.matmul %196, %1, %cst_71 {dimension_numbers = #tpu.dot_dimension_numbers<[1], [0], [0], [1], [0, 0, 1, 1], [], []>} : vector<2x128xf32>, vector<128x32xf32>, vector<2x32xf32> -> vector<2x32xf32>
    %198 = vector.broadcast %13 : vector<1x32xf32> to vector<2x32xf32>
    %199 = arith.addf %197, %198 : vector<2x32xf32>
    %200 = arith.addf %131, %199 : vector<2x32xf32>
    %cst_72 = arith.constant dense<0.000000e+00> : vector<2x128xf32>
    %201 = tpu.matmul %200, %5, %cst_72 {dimension_numbers = #tpu.dot_dimension_numbers<[1], [0], [0], [1], [0, 0, 1, 1], [], []>} : vector<2x32xf32>, vector<32x128xf32>, vector<2x128xf32> -> vector<2x128xf32>
    %202 = vector.broadcast %14 : vector<1x128xf32> to vector<2x128xf32>
    %203 = arith.addf %201, %202 : vector<2x128xf32>
    %c0_73 = arith.constant 0 : index
    %c0_74 = arith.constant 0 : index
    %204 = vector.load %arg6[%c0_73, %c0_74] : memref<2x128xf32, #tpu.memory_space<vmem>>, vector<2x128xf32>
    tpu.vector_store %arg6[%c0_73, %c0_74], %203 {strides = array<i32>} : memref<2x128xf32, #tpu.memory_space<vmem>>, vector<2x128xf32>,
    return
  }
}

</mosaic_0001>

<bundles_post_ra>
// kernel: small_vit_forward.1
= control target key start
LH: loop header
LB: loop body
LE: loop exit
PB: predicated region body
PF: predicated region fallthrough
CT: control target
= control target key end

     0   :  { %vm72_vm0 = vcmask 392192   ;;  %vm195_vm1 = vcmask 261120   ;;  %s2346_s15 = smov 96   ;;  %vm415_vm2 = vcmask 1040384   ;;  %s2347_s16 = smov 64   ;;  %vm2348_vm3 = vmmov 0   ;;  %s2819_s3 = inlined_call_operand.vmem [shape: f32[176,32], index: 3, kind: input, shape index: {}]   ;;  %s2820_s0 = inlined_call_operand.vmem [shape: f32[48,48], index: 0, kind: input, shape index: {}]   ;;  %s2821_s1 = inlined_call_operand.vmem [shape: f32[24,32], index: 1, kind: input, shape index: {}]   ;;  %s2822_s4 = inlined_call_operand.vmem [shape: f32[32,384], index: 4, kind: input, shape index: {}]   ;;  %s2823_s5 = inlined_call_operand.vmem [shape: f32[16,128], index: 5, kind: input, shape index: {}]   ;;  %s2824_s2 = inlined_call_operand.vmem [shape: f32[2,48], index: 2, kind: input, shape index: {}]   ;;  %s2825_s6 = inlined_call_operand.vmem [shape: f32[2,128], index: 6, kind: output, shape index: {}]  }
   0x1   :  { %v23_v0 = vld [vmem:[%s2819_s3] sm:$0xff]  ;;  %v24_v1 = vld [vmem:[%s2819_s3 + $0x8] sm:$0xff]  ;;  %v25_v2 = vld [vmem:[%s2819_s3 + $0x10] sm:$0xff]  ;;  %vm440_vm4 = vcmask 64512   ;;  %vm526_vm6 = vcmask 386048   ;;  %s2350_s19 = smov 88  }
   0x2   :  { %v2017_v3 = vpack.c.bf16 %v24_v1, %v23_v0  ;;  %v26_v4 = vld [vmem:[%s2819_s3 + $0x18] sm:$0xff]  ;;  %v27_v6 = vld [vmem:[%s2819_s3 + $0x20] sm:$0xff]  ;;  %v28_v7 = vld [vmem:[%s2819_s3 + $0x28] sm:$0xff]  ;;  %s2351_s20 = smov 120   ;;  %s2353_s21 = smov 80   ;;  %vm1242_vm7 = vcmask 130048  }
   0x3   :  { %v2021_v5 = vpack.c.bf16 %v26_v4, %v25_v2  ;;  %v66_v8 = vld [vmem:[%s2820_s0] sm:$0xff]  ;;  %v2025_v9 = vpack.c.bf16 %v28_v7, %v27_v6  ;;  %v67_v10 = vld [vmem:[%s2820_s0 + $0x8] sm:$0xff]  ;;  %v68_v11 = vld [vmem:[%s2820_s0 + $0x10] sm:$0xff]  ;;  %s2354_s22 = smov 112   ;;  %s2355_s23 = smov 48   ;;  %vm1244_vm8 = vcmask 195584  }
   0x4   :  { %2018 = vmatprep.subr.bf16.mxu0 %v2017_v3  ;;  %1803 = vmatprep.mubr.msk.f32.mxu0 %vm72_vm0, %v66_v8  ;;  %v69_v12 = vld [vmem:[%s2820_s0 + $0x18] sm:$0xff]  ;;  %v70_v13 = vld [vmem:[%s2820_s0 + $0x20] sm:$0xff]  ;;  %v71_v14 = vld [vmem:[%s2820_s0 + $0x28] sm:$0xff]  ;;  %s2356_s24 = smov 72   ;;  %s2357_s25 = smov 104   ;;  %vm1340_vm9 = vcmask 254976  }
   0x5   :  { %2020 = vmatpush3.bf16.msra.mxu0 %v2017_v3  ;;  %v186_v15 = vld [vmem:[%s2821_s1] sm:$0xff]  ;;  %v187_v17 = vld [vmem:[%s2821_s1 + $0x8] sm:$0xff]  ;;  %v188_v20 = vld [vmem:[%s2821_s1 + $0x10] sm:$0xff]  ;;  %s2358_s26 = smov 40   ;;  %s2359_s0 = smov 32  }
   0x6   :  { %2022 = vmatprep.subr.bf16.mxu0 %v2021_v5  ;;  %v2496_v2 = vld [vmem:[%s2822_s4] sm:$0xff]  ;;  %v2501_v3 = vld [vmem:[%s2822_s4 + $0x18] sm:$0xff]  ;;  %v2513_v6 = vld [vmem:[%s2822_s4 + $0x48] sm:$0xff]  ;;  %s2360_s1 = smov 16   ;;  %s2361_s27 = smov 8  }
   0x7   :  { %v2029_v4 = vpack.c.bf16 %v2501_v3, %v2496_v2  ;;  %vm2558_vm5 = vmpackc.low %vm440_vm4, %vm440_vm4  ;;  %s2362_s28 = smov 24  }
   0x9   :  { %2024 = vmatpush3.bf16.msra.mxu0 %v2021_v5  ;;  %v2508_v5 = vld [vmem:[%s2822_s4 + $0x30] sm:$0xff] }
   0xa   :  { %2026 = vmatprep.subr.bf16.mxu0 %v2025_v9  ;;  %v2033_v7 = vpack.c.bf16 %v2513_v6, %v2508_v5 }
   0xd   :  { %2028 = vmatpush3.bf16.msra.mxu0 %v2025_v9 }
   0xe   :  { %2030 = vmatprep.subr.bf16.mxu0 %v2029_v4 }
  0x10   :  { %1804 = vmatmul.mubr.msk.f32.vlgmr.msra.gmra.mrb[0].mxu0 %vm72_vm0, %v67_v10 }
  0x11   :  { %1806 = vmatprep.mubr.msk.f32.mxu0 %vm72_vm0, %v68_v11  ;;  %2032 = vmatpush3.bf16.msra.mxu0 %v2029_v4 }
  0x12   :  { %2034 = vmatprep.subr.bf16.mxu0 %v2033_v7 }
  0x14   :  { %1807 = vmatmul.mubr.msk.f32.gmra.mrb[2].mxu0 %vm72_vm0, %v69_v12 }
  0x15   :  { %1809 = vmatprep.mubr.msk.f32.mxu0 %vm72_vm0, %v70_v13  ;;  %2036 = vmatpush3.bf16.msra.mxu0 %v2033_v7 }
  0x18   :  { %1810 = vmatmul.mubr.msk.f32.gmra.mrb[4].mxu0 %vm72_vm0, %v71_v14 }
  0xe3   :  { %v1805_v16 = vpop.f32.mrb[0].mxu0 }
  0xe4   :  { %v157_v18 = vpop.f32.mrb[1].mxu0  ;;  %v190_v21 = vadd.f32 %v1805_v16, %v187_v17 }
  0xe5   :  { %v2446_v19 = vadd.f32 %v186_v15, %v157_v18 }
  0xe6   :  { %v199_v28 = vsel %vm195_vm1, %v190_v21, 0.0 }
  0xe7   :  { %v1808_v22 = vpop.f32.mrb[2].mxu0  ;;  %v196_v23 = vsel %vm195_vm1, %v2446_v19, 0.0 }
  0xe8   :  { %197 = vadd.xlane.f32.xlu0 %v196_v23  ;;  %v167_v24 = vpop.f32.mrb[3].mxu0  ;;  %v2453_v26 = vadd.f32 %v1808_v22, %v186_v15 }
  0xe9   :  { %v191_v25 = vadd.f32 %v188_v20, %v167_v24 }
  0xea   :  { %v205_v33 = vsel %vm195_vm1, %v2453_v26, 0.0 }
  0xeb   :  { %v1811_v27 = vpop.f32.mrb[4].mxu0  ;;  %v202_v29 = vsel %vm195_vm1, %v191_v25, 0.0 }
  0xec   :  { %200 = vadd.xlane.f32.xlu0 %v199_v28  ;;  %203 = vadd.xlane.f32.xlu1 %v202_v29  ;;  %v177_v30 = vpop.f32.mrb[5].mxu0  ;;  %v194_v31 = vadd.f32 %v1811_v27, %v188_v20  ;;  %v1631_v28 = vld [vmem:[%s2823_s5] ss:$0 sm:$0xff] }
  0xed   :  { %v193_v32 = vadd.f32 %v187_v17, %v177_v30 }
  0xee   :  { %v211_v35 = vsel %vm195_vm1, %v194_v31, 0.0 }
  0xef   :  { %v208_v34 = vsel %vm195_vm1, %v193_v32, 0.0 }
  0xf0   :  { %206 = vadd.xlane.f32.xlu1 %v205_v33  ;;  %209 = vadd.xlane.f32.xlu0 %v208_v34 }
  0xf4   :  { %212 = vadd.xlane.f32.xlu1 %v211_v35 }
 0x175   :  { %v198_v36 = vpop.xlane.xlu0 %197 }
 0x176   :  { %v215_v37 = vmul.f32 0.03125, %v198_v36 }
 0x178   :  { %v2462_v38 = vsub.f32 %v2446_v19, %v215_v37 }
 0x179   :  { %v201_v39 = vpop.xlane.xlu0 %200  ;;  %v204_v40 = vpop.xlane.xlu1 %203 }
 0x17a   :  { %v216_v41 = vmul.f32 0.03125, %v201_v39  ;;  %v217_v42 = vmul.f32 0.03125, %v204_v40  ;;  %v227_v43 = vmul.f32 %v2462_v38, %v2462_v38 }
 0x17c   :  { %v2466_v44 = vsub.f32 %v190_v21, %v216_v41  ;;  %v2468_v45 = vsub.f32 %v191_v25, %v217_v42  ;;  %v233_v46 = vsel %vm195_vm1, %v227_v43, 0.0 }
 0x17d   :  { %v207_v47 = vpop.xlane.xlu1 %206  ;;  %234 = vadd.xlane.f32.xlu0 %v233_v46  ;;  %v210_v48 = vpop.xlane.xlu0 %209 }
 0x17e   :  { %v218_v49 = vmul.f32 0.03125, %v207_v47  ;;  %v219_v50 = vmul.f32 0.03125, %v210_v48  ;;  %v228_v51 = vmul.f32 %v2466_v44, %v2466_v44  ;;  %v229_v52 = vmul.f32 %v2468_v45, %v2468_v45 }
 0x180   :  { %v2476_v53 = vsub.f32 %v2453_v26, %v218_v49  ;;  %v2478_v54 = vsub.f32 %v193_v32, %v219_v50  ;;  %v236_v55 = vsel %vm195_vm1, %v228_v51, 0.0  ;;  %v239_v56 = vsel %vm195_vm1, %v229_v52, 0.0 }
 0x181   :  { %237 = vadd.xlane.f32.xlu1 %v236_v55  ;;  %v213_v57 = vpop.xlane.xlu1 %212  ;;  %240 = vadd.xlane.f32.xlu0 %v239_v56  ;;  %v1633_v55 = vld [vmem:[%s2823_s5 + $0x2] ss:$0 sm:$0xff] }
 0x182   :  { %v220_v58 = vmul.f32 0.03125, %v213_v57  ;;  %v230_v59 = vmul.f32 %v2476_v53, %v2476_v53  ;;  %v231_v60 = vmul.f32 %v2478_v54, %v2478_v54 }
 0x184   :  { %v2486_v61 = vsub.f32 %v194_v31, %v220_v58  ;;  %v242_v62 = vsel %vm195_vm1, %v230_v59, 0.0  ;;  %v245_v63 = vsel %vm195_vm1, %v231_v60, 0.0  ;;  %v1632_v31 = vld [vmem:[%s2823_s5 + $0x1] ss:$0 sm:$0xff] }
 0x185   :  { %243 = vadd.xlane.f32.xlu1 %v242_v62  ;;  %246 = vadd.xlane.f32.xlu0 %v245_v63 }
 0x186   :  { %v232_v0 = vmul.f32 %v2486_v61, %v2486_v61 }
 0x188   :  { %v248_v1 = vsel %vm195_vm1, %v232_v0, 0.0 }
 0x189   :  { %249 = vadd.xlane.f32.xlu1 %v248_v1 }
 0x20a   :  { %v235_v8 = vpop.xlane.xlu0 %234 }
 0x20b   :  { %v251_v9 = vmul.f32 0.03125, %v235_v8 }
 0x20d   :  { %v257_v10 = vadd.f32 1e-05, %v251_v9 }
 0x20e   :  { %v238_v11 = vpop.xlane.xlu1 %237  ;;  %v241_v12 = vpop.xlane.xlu0 %240 }
 0x20f   :  { %2311 = vrsqrt.f32 %v257_v10  ;;  %v252_v13 = vmul.f32 0.03125, %v238_v11  ;;  %v253_v14 = vmul.f32 0.03125, %v241_v12 }
 0x211   :  { %v258_v15 = vadd.f32 1e-05, %v252_v13  ;;  %v259_v16 = vadd.f32 1e-05, %v253_v14  ;;  %v2349_v13 = vmov 0.0  }
 0x212   :  { %v244_v17 = vpop.xlane.xlu1 %243  ;;  %v247_v18 = vpop.xlane.xlu0 %246  ;;  %1841 = vmatprep.mubr.msk.f32.mxu1 %vm2348_vm3, %v2349_v13 }
 0x213   :  { %2313 = vrsqrt.f32 %v258_v15  ;;  %v254_v20 = vmul.f32 0.03125, %v244_v17  ;;  %v255_v21 = vmul.f32 0.03125, %v247_v18  ;;  %v2306_v17 = vpack.i.bf16 %v2513_v6, %v2508_v5 }
 0x214   :  { %2315 = vrsqrt.f32 %v259_v16  ;;  %v2301_v5 = vpack.i.bf16 %v2501_v3, %v2496_v2 }
 0x215   :  { %v260_v22 = vadd.f32 1e-05, %v254_v20  ;;  %v261_v23 = vadd.f32 1e-05, %v255_v21 }
 0x216   :  { %v250_v24 = vpop.xlane.xlu1 %249 }
 0x217   :  { %2317 = vrsqrt.f32 %v260_v22  ;;  %v256_v25 = vmul.f32 0.03125, %v250_v24 }
 0x218   :  { %2319 = vrsqrt.f32 %v261_v23 }
 0x219   :  { %v2312_v27 = vpop.eup %2311  ;;  %v262_v29 = vadd.f32 1e-05, %v256_v25 }
 0x21a   :  { %v269_v30 = vmul.f32 %v2312_v27, %v2462_v38 }
 0x21b   :  { %2321 = vrsqrt.f32 %v262_v29 }
 0x21c   :  { %v279_v32 = vmul.f32 %v1631_v28, %v269_v30 }
 0x21d   :  { %v2314_v33 = vpop.eup %2313 }
 0x21e   :  { %v2316_v34 = vpop.eup %2315  ;;  %v270_v35 = vmul.f32 %v2314_v33, %v2466_v44  ;;  %v289_v36 = vadd.f32 %v1632_v31, %v279_v32 }
 0x21f   :  { %v271_v37 = vmul.f32 %v2316_v34, %v2468_v45  ;;  %v2581_v34 = vld [vmem:[%s2824_s2] sm:$0x3]  ;;  %s2352_s2 = smov 56  }
 0x220   :  { %v280_v39 = vmul.f32 %v1631_v28, %v270_v35  ;;  %1820 = vmatprep.mubr.msk.f32.mxu0 %vm195_vm1, %v289_v36 }
 0x221   :  { %v2318_v40 = vpop.eup %2317  ;;  %v281_v41 = vmul.f32 %v1631_v28, %v271_v37 }
 0x222   :  { %v2320_v42 = vpop.eup %2319  ;;  %v290_v38 = vadd.f32 %v1632_v31, %v280_v39  ;;  %v272_v43 = vmul.f32 %v2318_v40, %v2476_v53 }
 0x223   :  { %v291_v46 = vadd.f32 %v1632_v31, %v281_v41  ;;  %v273_v47 = vmul.f32 %v2320_v42, %v2478_v54  ;;  %v2345_v54 = vmov 0.0|0.0  }
 0x224   :  { %1821 = vmatmul.mubr.msk.f32.vlgmr.msra.gmra.mrb[6].mxu0 %vm195_vm1, %v290_v38  ;;  %v282_v48 = vmul.f32 %v1631_v28, %v272_v43  ;;  %2037 = vmatprep.subr.bf16.mxu1 %v2345_v54 }
 0x225   :  { %v2322_v49 = vpop.eup %2321  ;;  %1823 = vmatprep.mubr.msk.f32.mxu0 %vm195_vm1, %v291_v46  ;;  %v283_v44 = vmul.f32 %v1631_v28, %v273_v47  ;;  %2049 = vmatprep.subr.bf16.mxu0 %v2345_v54 }
 0x226   :  { %v292_v45 = vadd.f32 %v1632_v31, %v282_v48  ;;  %v274_v50 = vmul.f32 %v2322_v49, %v2486_v61 }
 0x227   :  { %v293_v51 = vadd.f32 %v1632_v31, %v283_v44 }
 0x228   :  { %1824 = vmatmul.mubr.msk.f32.gmra.mrb[8].mxu0 %vm195_vm1, %v292_v45  ;;  %v284_v52 = vmul.f32 %v1631_v28, %v274_v50 }
 0x229   :  { %1826 = vmatprep.mubr.msk.f32.mxu0 %vm195_vm1, %v293_v51 }
 0x22a   :  { %v294_v53 = vadd.f32 %v1632_v31, %v284_v52 }
 0x22c   :  { %1827 = vmatmul.mubr.msk.f32.gmra.mrb[10].mxu0 %vm195_vm1, %v294_v53 }
 0x22d   :  { %1856 = vmatprep.mubr.msk.f32.mxu0 %vm2348_vm3, %v2349_v13 }
 0x2f7   :  { %v1822_v56 = vpop.f32.mrb[6].mxu0 }
 0x2f8   :  { %v389_v57 = vadd.f32 %v1822_v56, %v1633_v55  ;;  %v383_v58 = vpop.f32.mrb[7].mxu0 }
 0x2f9   :  { %v384_v59 = vadd.f32 %v1633_v55, %v383_v58 }
 0x2fb   :  { %v1825_v60 = vpop.f32.mrb[8].mxu0  ;;  %v2540_v61 = vpack.i.bf16 %v389_v57, %v384_v59 }
 0x2fc   :  { %v399_v62 = vadd.f32 %v1825_v60, %v1633_v55  ;;  %v393_v63 = vpop.f32.mrb[9].mxu0 }
 0x2fd   :  { %v394_v0 = vadd.f32 %v1633_v55, %v393_v63  ;;  %2182 = vrot.lane.b32.xlu0 %v2540_v61, %s2346_s15 }
 0x2fe   :  { %v413_v1 = vrot.slane %v399_v62, 7 }
 0x2ff   :  { %v1828_v4 = vpop.f32.mrb[10].mxu0  ;;  %v2543_v7 = vpack.i.bf16 %v399_v62, %v394_v0 }
 0x300   :  { %v409_v8 = vadd.f32 %v1828_v4, %v1633_v55  ;;  %v403_v9 = vpop.f32.mrb[11].mxu0  ;;  %v416_v10 = vsel %vm415_vm2, %v384_v59, %v413_v1 }
 0x301   :  { %v404_v11 = vadd.f32 %v1633_v55, %v403_v9  ;;  %2197 = vrot.lane.b32.xlu0 %v2540_v61, %s2347_s16  ;;  %2187 = vrot.lane.b32.xlu1 %v2543_v7, %s2346_s15  ;;  %v2572_v33 = vmul.f32 0.35355338, %v416_v10 }
 0x303   :  { %v2549_v12 = vpack.i.bf16 %v409_v8, %v404_v11 }
 0x305   :  { %2192 = vrot.lane.b32.xlu1 %v2549_v12, %s2346_s15 }
 0x36f   :  { %v2183_v14 = vpop.permute.xlu0 %2182 }
 0x370   :  { %v2185_v15 = vunpack.i.h.bf16 %v2183_v14  ;;  %v2184_v16 = vunpack.i.l.bf16 %v2183_v14 }
 0x372   :  { %v2038_v18 = vpack.c.bf16 %v2185_v15, %v2184_v16 }
 0x373   :  { %v2188_v20 = vpop.permute.xlu1 %2187  ;;  %v2198_v21 = vpop.permute.xlu0 %2197 }
 0x374   :  { %v2200_v22 = vunpack.i.h.bf16 %v2198_v21  ;;  %v2199_v23 = vunpack.i.l.bf16 %v2198_v21  ;;  %2040 = vmatpush3.bf16.xpose.msk.msra.mxu1 %vm2558_vm5, %v2038_v18  ;;  %v2190_v24 = vunpack.i.h.bf16 %v2188_v20  ;;  %v2189_v25 = vunpack.i.l.bf16 %v2188_v20 }
 0x375   :  { %2041 = vmatprep.subr.bf16.mxu1 %v2345_v54 }
 0x376   :  { %v2050_v27 = vpack.c.bf16 %v2200_v22, %v2199_v23  ;;  %v2042_v28 = vpack.c.bf16 %v2190_v24, %v2189_v25 }
 0x377   :  { %v2193_v29 = vpop.permute.xlu1 %2192 }
 0x378   :  { %2051 = vmatpush3.bf16.msra.mxu0 %v2050_v27  ;;  %v2195_v30 = vunpack.i.h.bf16 %v2193_v29  ;;  %v2194_v31 = vunpack.i.l.bf16 %v2193_v29 }
 0x379   :  { %2052 = vmatprep.subr.bf16.mxu0 %v2345_v54 }
 0x37a   :  { %v2046_v32 = vpack.c.bf16 %v2195_v30, %v2194_v31 }
 0x37c   :  { %2044 = vmatpush3.bf16.xpose.msk.msra.mxu1 %vm2558_vm5, %v2042_v28 }
 0x37d   :  { %2045 = vmatprep.subr.bf16.mxu1 %v2345_v54 }
 0x384   :  { %2048 = vmatpush3.bf16.xpose.msk.msra.mxu1 %vm2558_vm5, %v2046_v32 }
 0x385   :  { %2070 = vmatprep.subr.bf16.mxu1 %v2345_v54 }
 0x38b   :  { %1842 = vmatmul.mubr.msk.f32.vlgmr.msra.gmra.mrb[0].mxu1 %vm440_vm4, %v2572_v33 }
 0x38c   :  { %1886 = vmatprep.mubr.msk.f32.mxu1 %vm2348_vm3, %v2349_v13 }
 0x45e   :  { %v522_v35 = vpop.f32.mrb[0].mxu1 }
 0x45f   :  { %v523_v36 = vadd.f32 %v522_v35, %v2581_v34  ;;  %v1843_v37 = vpop.f32.mrb[1].mxu1 }
 0x461   :  { %v527_v39 = vsel %vm526_vm6, %v523_v36, -inf }
 0x462   :  { %528 = vmax.xlane.f32.xlu1 %v527_v39 }
 0x473   :  { %2202 = vrot.lane.b32.xlu1 %v2543_v7, %s2347_s16 }
 0x477   :  { %2207 = vrot.lane.b32.xlu1 %v2549_v12, %s2347_s16 }
 0x47b   :  { %2217 = vrot.lane.b32.xlu1 %v2543_v7, %s2350_s19 }
 0x47f   :  { %629 = vrot.lane.b32.xlu1 %v2572_v33, %s2351_s20 }
 0x483   :  { %2232 = vrot.lane.b32.xlu1 %v2543_v7, %s2352_s2 }
 0x4ef   :  { %v529_v40 = vpop.xlane.xlu1 %528 }
 0x4f0   :  { %v530_v41 = vsub.f32 %v523_v36, %v529_v40 }
 0x4f2   :  { %v531_v42 = vmul.f32 1.442695, %v530_v41 }
 0x4f3   :  { %v2203_v38 = vpop.permute.xlu1 %2202 }
 0x4f4   :  { %2323 = vpow2.f32 %v531_v42  ;;  %v2205_v43 = vunpack.i.h.bf16 %v2203_v38  ;;  %v2204_v46 = vunpack.i.l.bf16 %v2203_v38 }
 0x4f6   :  { %v2053_v47 = vpack.c.bf16 %v2205_v43, %v2204_v46 }
 0x4f7   :  { %v2208_v48 = vpop.permute.xlu1 %2207 }
 0x4f8   :  { %v2210_v49 = vunpack.i.h.bf16 %v2208_v48  ;;  %v2209_v44 = vunpack.i.l.bf16 %v2208_v48  ;;  %2054 = vmatpush3.bf16.msra.mxu0 %v2053_v47 }
 0x4f9   :  { %2055 = vmatprep.subr.bf16.mxu0 %v2345_v54 }
 0x4fa   :  { %v2056_v45 = vpack.c.bf16 %v2210_v49, %v2209_v44 }
 0x4fb   :  { %v2218_v60 = vpop.permute.xlu1 %2217 }
 0x4fc   :  { %2057 = vmatpush3.bf16.msra.mxu0 %v2056_v45  ;;  %v2220_v62 = vunpack.i.h.bf16 %v2218_v60  ;;  %v2219_v63 = vunpack.i.l.bf16 %v2218_v60 }
 0x4fd   :  { %2058 = vmatprep.subr.bf16.mxu0 %v2345_v54 }
 0x4fe   :  { %v2324_v50 = vpop.eup %2323  ;;  %v2063_v0 = vpack.c.bf16 %v2220_v62, %v2219_v63 }
 0x4ff   :  { %v533_v51 = vsel %vm526_vm6, %v2324_v50, 0.0  ;;  %v630_v10 = vpop.permute.xlu1 %629 }
 0x500   :  { %534 = vadd.xlane.f32.xlu0 %v533_v51 }
 0x503   :  { %v2233_v24 = vpop.permute.xlu1 %2232 }
 0x504   :  { %v2235_v29 = vunpack.i.h.bf16 %v2233_v24  ;;  %v2234_v30 = vunpack.i.l.bf16 %v2233_v24 }
 0x506   :  { %v2074_v35 = vpack.c.bf16 %v2235_v29, %v2234_v30 }
 0x516   :  { %2212 = vrot.lane.b32.xlu0 %v2540_v61, %s2350_s19 }
 0x51a   :  { %2222 = vrot.lane.b32.xlu0 %v2549_v12, %s2350_s19 }
 0x58d   :  { %v535_v52 = vpop.xlane.xlu0 %534 }
 0x58e   :  { %2325 = vrcp.f32 %v535_v52 }
 0x591   :  { %v2213_v53 = vpop.permute.xlu0 %2212 }
 0x592   :  { %v2215_v55 = vunpack.i.h.bf16 %v2213_v53  ;;  %v2214_v56 = vunpack.i.l.bf16 %v2213_v53 }
 0x594   :  { %v2059_v59 = vpack.c.bf16 %v2215_v55, %v2214_v56 }
 0x595   :  { %v2223_v1 = vpop.permute.xlu0 %2222 }
 0x596   :  { %v2225_v4 = vunpack.i.h.bf16 %v2223_v1  ;;  %v2224_v8 = vunpack.i.l.bf16 %v2223_v1 }
 0x598   :  { %v2326_v57 = vpop.eup %2325  ;;  %v2067_v9 = vpack.c.bf16 %v2225_v4, %v2224_v8 }
 0x599   :  { %v537_v58 = vmul.f32 %v2326_v57, %v2324_v50 }
 0x59b   :  { %1857 = vmatmul.mubr.msk.f32.vlgmr.msra.gmra.mrb[12].mxu0 %vm72_vm0, %v537_v58 }
 0x59c   :  { %2061 = vmatpush3.bf16.xpose.msk.msra.mxu0 %vm2558_vm5, %v2059_v59  ;;  %1871 = vmatprep.mubr.msk.f32.mxu0 %vm2348_vm3, %v2349_v13 }
 0x59d   :  { %2062 = vmatprep.subr.bf16.mxu0 %v2345_v54 }
 0x5a4   :  { %2065 = vmatpush3.bf16.xpose.msk.msra.mxu0 %vm2558_vm5, %v2063_v0 }
 0x5a5   :  { %2066 = vmatprep.subr.bf16.mxu0 %v2345_v54 }
 0x5ac   :  { %2069 = vmatpush3.bf16.xpose.msk.msra.mxu0 %vm2558_vm5, %v2067_v9 }
 0x5ad   :  { %2091 = vmatprep.subr.bf16.mxu0 %v2345_v54 }
 0x5b3   :  { %1872 = vmatmul.mubr.msk.f32.vlgmr.msra.gmra.mrb[14].mxu0 %vm440_vm4, %v630_v10 }
 0x5b4   :  { %1916 = vmatprep.mubr.msk.f32.mxu0 %vm2348_vm3, %v2349_v13 }
 0x66e   :  { %v2613_v11 = vpop.f32.mrb[12].mxu0 }
 0x66f   :  { %v1858_v14 = vpop.f32.mrb[13].mxu0 }
 0x686   :  { %v723_v15 = vpop.f32.mrb[14].mxu0 }
 0x687   :  { %v724_v16 = vadd.f32 %v723_v15, %v2581_v34  ;;  %v1873_v18 = vpop.f32.mrb[15].mxu0 }
 0x689   :  { %v727_v20 = vsel %vm526_vm6, %v724_v16, -inf }
 0x68a   :  { %728 = vmax.xlane.f32.xlu0 %v727_v20 }
 0x6a0   :  { %2227 = vrot.lane.b32.xlu0 %v2540_v61, %s2352_s2 }
 0x6a4   :  { %2237 = vrot.lane.b32.xlu0 %v2549_v12, %s2352_s2 }
 0x6a8   :  { %2247 = vrot.lane.b32.xlu0 %v2543_v7, %s2353_s21 }
 0x6ac   :  { %829 = vrot.lane.b32.xlu0 %v2572_v33, %s2354_s22 }
 0x6b0   :  { %2257 = vrot.lane.b32.xlu0 %v2540_v61, %s2355_s23 }
 0x717   :  { %v729_v21 = vpop.xlane.xlu0 %728 }
 0x718   :  { %v730_v22 = vsub.f32 %v724_v16, %v729_v21 }
 0x71a   :  { %v731_v23 = vmul.f32 1.442695, %v730_v22 }
 0x71b   :  { %v2228_v25 = vpop.permute.xlu0 %2227 }
 0x71c   :  { %2327 = vpow2.f32 %v731_v23  ;;  %v2230_v27 = vunpack.i.h.bf16 %v2228_v25  ;;  %v2229_v28 = vunpack.i.l.bf16 %v2228_v25 }
 0x71e   :  { %v2071_v31 = vpack.c.bf16 %v2230_v27, %v2229_v28 }
 0x71f   :  { %v2238_v32 = vpop.permute.xlu0 %2237 }
 0x720   :  { %2072 = vmatpush3.bf16.msra.mxu1 %v2071_v31  ;;  %v2240_v36 = vunpack.i.h.bf16 %v2238_v32  ;;  %v2239_v37 = vunpack.i.l.bf16 %v2238_v32 }
 0x721   :  { %2073 = vmatprep.subr.bf16.mxu1 %v2345_v54 }
 0x722   :  { %v2077_v41 = vpack.c.bf16 %v2240_v36, %v2239_v37 }
 0x723   :  { %v2248_v39 = vpop.permute.xlu0 %2247 }
 0x724   :  { %2075 = vmatpush3.bf16.msra.mxu1 %v2074_v35  ;;  %v2250_v55 = vunpack.i.h.bf16 %v2248_v39  ;;  %v2249_v56 = vunpack.i.l.bf16 %v2248_v39 }
 0x725   :  { %2076 = vmatprep.subr.bf16.mxu1 %v2345_v54 }
 0x726   :  { %v2328_v40 = vpop.eup %2327  ;;  %v2084_v57 = vpack.c.bf16 %v2250_v55, %v2249_v56 }
 0x727   :  { %v830_v42 = vpop.permute.xlu0 %829  ;;  %v733_v38 = vsel %vm526_vm6, %v2328_v40, 0.0 }
 0x728   :  { %734 = vadd.xlane.f32.xlu1 %v733_v38  ;;  %2078 = vmatpush3.bf16.msra.mxu1 %v2077_v41 }
 0x729   :  { %2079 = vmatprep.subr.bf16.mxu1 %v2345_v54 }
 0x72b   :  { %v2258_v43 = vpop.permute.xlu0 %2257 }
 0x72c   :  { %v2260_v46 = vunpack.i.h.bf16 %v2258_v43  ;;  %v2259_v47 = vunpack.i.l.bf16 %v2258_v43 }
 0x72e   :  { %v2092_v48 = vpack.c.bf16 %v2260_v46, %v2259_v47 }
 0x730   :  { %2093 = vmatpush3.bf16.msra.mxu0 %v2092_v48 }
 0x731   :  { %2094 = vmatprep.subr.bf16.mxu0 %v2345_v54 }
 0x739   :  { %2242 = vrot.lane.b32.xlu1 %v2540_v61, %s2353_s21 }
 0x73d   :  { %2252 = vrot.lane.b32.xlu1 %v2549_v12, %s2353_s21 }
 0x7b5   :  { %v735_v49 = vpop.xlane.xlu1 %734 }
 0x7b6   :  { %2329 = vrcp.f32 %v735_v49 }
 0x7b9   :  { %v2243_v44 = vpop.permute.xlu1 %2242 }
 0x7ba   :  { %v2245_v45 = vunpack.i.h.bf16 %v2243_v44  ;;  %v2244_v50 = vunpack.i.l.bf16 %v2243_v44 }
 0x7bc   :  { %v2080_v53 = vpack.c.bf16 %v2245_v45, %v2244_v50 }
 0x7bd   :  { %v2253_v58 = vpop.permute.xlu1 %2252 }
 0x7be   :  { %v2255_v59 = vunpack.i.h.bf16 %v2253_v58  ;;  %v2254_v60 = vunpack.i.l.bf16 %v2253_v58 }
 0x7c0   :  { %v2330_v51 = vpop.eup %2329  ;;  %v2088_v62 = vpack.c.bf16 %v2255_v59, %v2254_v60 }
 0x7c1   :  { %v737_v52 = vmul.f32 %v2330_v51, %v2328_v40 }
 0x7c3   :  { %1887 = vmatmul.mubr.msk.f32.vlgmr.msra.gmra.mrb[2].mxu1 %vm72_vm0, %v737_v52 }
 0x7c4   :  { %2082 = vmatpush3.bf16.xpose.msk.msra.mxu1 %vm2558_vm5, %v2080_v53  ;;  %1901 = vmatprep.mubr.msk.f32.mxu1 %vm2348_vm3, %v2349_v13 }
 0x7c5   :  { %2083 = vmatprep.subr.bf16.mxu1 %v2345_v54 }
 0x7cc   :  { %2086 = vmatpush3.bf16.xpose.msk.msra.mxu1 %vm2558_vm5, %v2084_v57 }
 0x7cd   :  { %2087 = vmatprep.subr.bf16.mxu1 %v2345_v54 }
 0x7d4   :  { %2090 = vmatpush3.bf16.xpose.msk.msra.mxu1 %vm2558_vm5, %v2088_v62 }
 0x7d5   :  { %2112 = vmatprep.subr.bf16.mxu1 %v2345_v54 }
 0x7db   :  { %1902 = vmatmul.mubr.msk.f32.vlgmr.msra.gmra.mrb[4].mxu1 %vm440_vm4, %v830_v42 }
 0x7dc   :  { %1946 = vmatprep.mubr.msk.f32.mxu1 %vm2348_vm3, %v2349_v13 }
 0x896   :  { %v2650_v63 = vpop.f32.mrb[2].mxu1 }
 0x897   :  { %v1888_v0 = vpop.f32.mrb[3].mxu1 }
 0x8ae   :  { %v923_v1 = vpop.f32.mrb[4].mxu1 }
 0x8af   :  { %v924_v4 = vadd.f32 %v923_v1, %v2581_v34  ;;  %v1903_v8 = vpop.f32.mrb[5].mxu1 }
 0x8b1   :  { %v927_v9 = vsel %vm526_vm6, %v924_v4, -inf }
 0x8b2   :  { %928 = vmax.xlane.f32.xlu1 %v927_v9 }
 0x8c3   :  { %2262 = vrot.lane.b32.xlu1 %v2543_v7, %s2355_s23 }
 0x8c7   :  { %2267 = vrot.lane.b32.xlu1 %v2549_v12, %s2355_s23 }
 0x8cb   :  { %2277 = vrot.lane.b32.xlu1 %v2543_v7, %s2356_s24 }
 0x8cf   :  { %1029 = vrot.lane.b32.xlu1 %v2572_v33, %s2357_s25 }
 0x93f   :  { %v929_v10 = vpop.xlane.xlu1 %928 }
 0x940   :  { %v930_v14 = vsub.f32 %v924_v4, %v929_v10 }
 0x942   :  { %v931_v15 = vmul.f32 1.442695, %v930_v14 }
 0x943   :  { %v2263_v16 = vpop.permute.xlu1 %2262 }
 0x944   :  { %2331 = vpow2.f32 %v931_v15  ;;  %v2265_v18 = vunpack.i.h.bf16 %v2263_v16  ;;  %v2264_v20 = vunpack.i.l.bf16 %v2263_v16 }
 0x946   :  { %v2095_v21 = vpack.c.bf16 %v2265_v18, %v2264_v20 }
 0x947   :  { %v2268_v22 = vpop.permute.xlu1 %2267 }
 0x948   :  { %v2270_v23 = vunpack.i.h.bf16 %v2268_v22  ;;  %v2269_v24 = vunpack.i.l.bf16 %v2268_v22  ;;  %2096 = vmatpush3.bf16.msra.mxu0 %v2095_v21 }
 0x949   :  { %2097 = vmatprep.subr.bf16.mxu0 %v2345_v54 }
 0x94a   :  { %v2098_v25 = vpack.c.bf16 %v2270_v23, %v2269_v24 }
 0x94b   :  { %v2278_v37 = vpop.permute.xlu1 %2277 }
 0x94c   :  { %2099 = vmatpush3.bf16.msra.mxu0 %v2098_v25  ;;  %v2280_v39 = vunpack.i.h.bf16 %v2278_v37  ;;  %v2279_v40 = vunpack.i.l.bf16 %v2278_v37 }
 0x94d   :  { %2100 = vmatprep.subr.bf16.mxu0 %v2345_v54 }
 0x94e   :  { %v2332_v27 = vpop.eup %2331  ;;  %v2105_v41 = vpack.c.bf16 %v2280_v39, %v2279_v40 }
 0x94f   :  { %v933_v33 = vsel %vm526_vm6, %v2332_v27, 0.0  ;;  %v1030_v47 = vpop.permute.xlu1 %1029 }
 0x950   :  { %934 = vadd.xlane.f32.xlu0 %v933_v33 }
 0x966   :  { %2272 = vrot.lane.b32.xlu0 %v2540_v61, %s2356_s24 }
 0x96a   :  { %2282 = vrot.lane.b32.xlu0 %v2549_v12, %s2356_s24 }
 0x9dd   :  { %v935_v28 = vpop.xlane.xlu0 %934 }
 0x9de   :  { %2333 = vrcp.f32 %v935_v28 }
 0x9e1   :  { %v2273_v29 = vpop.permute.xlu0 %2272 }
 0x9e2   :  { %v2275_v30 = vunpack.i.h.bf16 %v2273_v29  ;;  %v2274_v31 = vunpack.i.l.bf16 %v2273_v29  ;;  %v418_v29 = vrot.slane %v2453_v26, 7 }
 0x9e4   :  { %v2101_v36 = vpack.c.bf16 %v2275_v30, %v2274_v31  ;;  %v1672_v30 = vld [vmem:[%s2823_s5 + $0x3] ss:$0 sm:$0xff] }
 0x9e5   :  { %v2283_v42 = vpop.permute.xlu0 %2282 }
 0x9e6   :  { %v2285_v38 = vunpack.i.h.bf16 %v2283_v42  ;;  %v2284_v43 = vunpack.i.l.bf16 %v2283_v42 }
 0x9e8   :  { %v2334_v32 = vpop.eup %2333  ;;  %v2109_v46 = vpack.c.bf16 %v2285_v38, %v2284_v43  ;;  %v49_v38 = vld [vmem:[%s2822_s4 + $0x8] sm:$0xff] }
 0x9e9   :  { %v937_v35 = vmul.f32 %v2334_v32, %v2332_v27 }
 0x9eb   :  { %1917 = vmatmul.mubr.msk.f32.vlgmr.msra.gmra.mrb[16].mxu0 %vm72_vm0, %v937_v35  ;;  %v420_v35 = vsel %vm415_vm2, %v2446_v19, %v418_v29  ;;  %v50_v19 = vld [vmem:[%s2822_s4 + $0x20] sm:$0xff] }
 0x9ec   :  { %2103 = vmatpush3.bf16.xpose.msk.msra.mxu0 %vm2558_vm5, %v2101_v36  ;;  %1931 = vmatprep.mubr.msk.f32.mxu0 %vm2348_vm3, %v2349_v13  ;;  %v2128_v43 = vpack.c.bf16 %v50_v19, %v49_v38 }
 0x9ed   :  { %2104 = vmatprep.subr.bf16.mxu0 %v2345_v54 }
 0x9f4   :  { %2107 = vmatpush3.bf16.xpose.msk.msra.mxu0 %vm2558_vm5, %v2105_v41 }
 0x9f5   :  { %2108 = vmatprep.subr.bf16.mxu0 %v2345_v54 }
 0x9fc   :  { %2111 = vmatpush3.bf16.xpose.msk.msra.mxu0 %vm2558_vm5, %v2109_v46  ;;  %v51_v46 = vld [vmem:[%s2822_s4 + $0x38] sm:$0xff] }
 0x9fd   :  { %2127 = vmatprep.subr.bf16.mxu0 %v2345_v54 }
 0xa03   :  { %1932 = vmatmul.mubr.msk.f32.vlgmr.msra.gmra.mrb[18].mxu0 %vm440_vm4, %v1030_v47  ;;  %v52_v47 = vld [vmem:[%s2822_s4 + $0x50] sm:$0xff] }
 0xa04   :  { %1968 = vmatprep.mubr.msk.f32.mxu0 %vm2348_vm3, %v2349_v13  ;;  %2129 = vmatpush3.bf16.msra.mxu0 %v2128_v43 }
 0xa05   :  { %2130 = vmatprep.subr.bf16.mxu0 %v2345_v54 }
 0xabe   :  { %v1025_v48 = vpop.f32.mrb[16].mxu0 }
 0xabf   :  { %v1918_v49 = vpop.f32.mrb[17].mxu0 }
 0xad6   :  { %v1123_v44 = vpop.f32.mrb[18].mxu0 }
 0xad7   :  { %v1124_v45 = vadd.f32 %v1123_v44, %v2581_v34  ;;  %v1933_v50 = vpop.f32.mrb[19].mxu0 }
 0xad9   :  { %v1127_v51 = vsel %vm526_vm6, %v1124_v45, -inf }
 0xada   :  { %1128 = vmax.xlane.f32.xlu0 %v1127_v51  ;;  %v1674_v51 = vld [vmem:[%s2823_s5 + $0x4] ss:$0 sm:$0xff] }
 0xaf0   :  { %2287 = vrot.lane.b32.xlu0 %v2540_v61, %s2358_s26 }
 0xaf4   :  { %2297 = vrot.lane.b32.xlu0 %v2549_v12, %s2358_s26 }
 0xaf8   :  { %2307 = vrot.lane.b32.xlu0 %v2306_v17, %s2359_s0 }
 0xafc   :  { %1234 = vrot.lane.b32.xlu0 %v1025_v48, %s2360_s1  ;;  %v2131_v48 = vpack.c.bf16 %v52_v47, %v51_v46 }
 0xafe   :  { %2132 = vmatpush3.bf16.msra.mxu0 %v2131_v48 }
 0xaff   :  { %2157 = vmatprep.subr.bf16.mxu0 %v2345_v54 }
 0xb67   :  { %v1129_v52 = vpop.xlane.xlu0 %1128 }
 0xb68   :  { %v1130_v53 = vsub.f32 %v1124_v45, %v1129_v52  ;;  %v1675_v52 = vld [vmem:[%s2823_s5 + $0x5] ss:$0 sm:$0xff] }
 0xb6a   :  { %v1131_v55 = vmul.f32 1.442695, %v1130_v53 }
 0xb6b   :  { %v2288_v34 = vpop.permute.xlu0 %2287 }
 0xb6c   :  { %2335 = vpow2.f32 %v1131_v55  ;;  %v2290_v56 = vunpack.i.h.bf16 %v2288_v34  ;;  %v2289_v57 = vunpack.i.l.bf16 %v2288_v34  ;;  %v29_v34 = vld [vmem:[%s2819_s3 + $0x30] sm:$0xff] }
 0xb6e   :  { %v2113_v58 = vpack.c.bf16 %v2290_v56, %v2289_v57  ;;  %v30_v56 = vld [vmem:[%s2819_s3 + $0x38] sm:$0xff] }
 0xb6f   :  { %v2298_v59 = vpop.permute.xlu0 %2297  ;;  %v2134_v57 = vpack.c.bf16 %v30_v56, %v29_v34  ;;  %v1679_v56 = vld [vmem:[%s2823_s5 + $0x8] ss:$0 sm:$0xff] }
 0xb70   :  { %2114 = vmatpush3.bf16.msra.mxu1 %v2113_v58  ;;  %v2300_v1 = vunpack.i.h.bf16 %v2298_v59  ;;  %v2299_v4 = vunpack.i.l.bf16 %v2298_v59  ;;  %v31_v58 = vld [vmem:[%s2819_s3 + $0x40] sm:$0xff] }
 0xb71   :  { %2115 = vmatprep.subr.bf16.mxu1 %v2345_v54  ;;  %v35_v59 = vld [vmem:[%s2819_s3 + $0x60] sm:$0xff] }
 0xb72   :  { %v2119_v3 = vpack.c.bf16 %v2300_v1, %v2299_v4  ;;  %v38_v1 = vld [vmem:[%s2819_s3 + $0x78] sm:$0xff] }
 0xb76   :  { %v2336_v61 = vpop.eup %2335 }
 0xb77   :  { %v1133_v12 = vsel %vm526_vm6, %v2336_v61, 0.0 }
 0xb78   :  { %1134 = vadd.xlane.f32.xlu1 %v1133_v12  ;;  %v33_v12 = vld [vmem:[%s2819_s3 + $0x50] sm:$0xff] }
 0xb89   :  { %2292 = vrot.lane.b32.xlu1 %v2543_v7, %s2358_s26  ;;  %v2308_v7 = vpop.permute.xlu0 %2307 }
 0xb8a   :  { %v2310_v15 = vunpack.i.h.bf16 %v2308_v7 }
 0xb8d   :  { %2302 = vrot.lane.b32.xlu1 %v2301_v5, %s2359_s0  ;;  %v1235_v25 = vpop.permute.xlu0 %1234  ;;  %v34_v5 = vld [vmem:[%s2819_s3 + $0x58] sm:$0xff] }
 0xb91   :  { %1230 = vrot.lane.b32.xlu1 %v2650_v63, %s2361_s27  ;;  %v2309_v63 = vunpack.i.l.bf16 %v2308_v7  ;;  %v43_v7 = vld [vmem:[%s2819_s3 + $0xa0] sm:$0xff] }
 0xb93   :  { %v2125_v20 = vpack.c.bf16 %v2310_v15, %v2309_v63  ;;  %v44_v15 = vld [vmem:[%s2819_s3 + $0xa8] sm:$0xff] }
 0xb94   :  { %v2155_v63 = vpack.c.bf16 %v44_v15, %v43_v7 }
 0xc05   :  { %v1135_v6 = vpop.xlane.xlu1 %1134 }
 0xc06   :  { %2337 = vrcp.f32 %v1135_v6  ;;  %v2140_v6 = vpack.c.bf16 %v34_v5, %v33_v12 }
 0xc09   :  { %v2293_v60 = vpop.permute.xlu1 %2292 }
 0xc0a   :  { %v2295_v62 = vunpack.i.h.bf16 %v2293_v60  ;;  %v2294_v0 = vunpack.i.l.bf16 %v2293_v60  ;;  %v36_v60 = vld [vmem:[%s2819_s3 + $0x68] sm:$0xff] }
 0xc0c   :  { %v2116_v8 = vpack.c.bf16 %v2295_v62, %v2294_v0  ;;  %v2143_v62 = vpack.c.bf16 %v36_v60, %v35_v59  ;;  %v37_v0 = vld [vmem:[%s2819_s3 + $0x70] sm:$0xff] }
 0xc0d   :  { %v2303_v9 = vpop.permute.xlu1 %2302  ;;  %v2146_v4 = vpack.c.bf16 %v38_v1, %v37_v0 }
 0xc0e   :  { %v2305_v10 = vunpack.i.h.bf16 %v2303_v9  ;;  %v2304_v14 = vunpack.i.l.bf16 %v2303_v9  ;;  %2117 = vmatpush3.bf16.msra.mxu1 %v2116_v8  ;;  %v39_v8 = vld [vmem:[%s2819_s3 + $0x80] sm:$0xff]  ;;  %v40_v9 = vld [vmem:[%s2819_s3 + $0x88] sm:$0xff] }
 0xc0f   :  { %2118 = vmatprep.subr.bf16.mxu1 %v2345_v54 }
 0xc10   :  { %v2338_v2 = vpop.eup %2337  ;;  %v2122_v16 = vpack.c.bf16 %v2305_v10, %v2304_v14  ;;  %v2149_v10 = vpack.c.bf16 %v40_v9, %v39_v8  ;;  %v41_v14 = vld [vmem:[%s2819_s3 + $0x90] sm:$0xff] }
 0xc11   :  { %v1137_v18 = vmul.f32 %v2338_v2, %v2336_v61  ;;  %v1231_v23 = vpop.permute.xlu1 %1230  ;;  %v42_v2 = vld [vmem:[%s2819_s3 + $0x98] sm:$0xff] }
 0xc12   :  { %2120 = vmatpush3.bf16.msra.mxu1 %v2119_v3  ;;  %v1241_v24 = vsel %vm440_vm4, %v2613_v11, %v1231_v23  ;;  %v2152_v3 = vpack.c.bf16 %v42_v2, %v41_v14 }
 0xc13   :  { %2121 = vmatprep.subr.bf16.mxu1 %v2345_v54  ;;  %v1243_v27 = vsel %vm1242_vm7, %v1241_v24, %v1235_v25 }
 0xc15   :  { %1947 = vmatmul.mubr.msk.f32.vlgmr.msra.gmra.mrb[6].mxu1 %vm72_vm0, %v1137_v18  ;;  %v54_v18 = vld [vmem:[%s2822_s4 + $0x28] sm:$0xff] }
 0xc16   :  { %2123 = vmatpush3.bf16.msra.mxu1 %v2122_v16  ;;  %1957 = vmatprep.mubr.msk.f32.mxu1 %vm2348_vm3, %v2349_v13  ;;  %v53_v16 = vld [vmem:[%s2822_s4 + $0x10] sm:$0xff] }
 0xc17   :  { %2124 = vmatprep.subr.bf16.mxu1 %v2345_v54 }
 0xc1a   :  { %2126 = vmatpush3.bf16.msra.mxu1 %v2125_v20  ;;  %v2158_v20 = vpack.c.bf16 %v54_v18, %v53_v16 }
 0xc1b   :  { %2133 = vmatprep.subr.bf16.mxu1 %v2345_v54 }
 0xce8   :  { %v1225_v21 = vpop.f32.mrb[6].mxu1 }
 0xce9   :  { %1238 = vrot.lane.b32.xlu1 %v1225_v21, %s2362_s28  ;;  %v1948_v22 = vpop.f32.mrb[7].mxu1  ;;  %v1676_v21 = vld [vmem:[%s2823_s5 + $0x6] ss:$0 sm:$0xff] }
 0xd5b   :  { %v1239_v33 = vpop.permute.xlu1 %1238 }
 0xd5c   :  { %v1245_v28 = vsel %vm1244_vm8, %v1243_v27, %v1239_v33 }
 0xd5d   :  { %1958 = vmatmul.mubr.msk.f32.vlgmr.msra.gmra.mrb[8].mxu1 %vm195_vm1, %v1245_v28 }
 0xd5e   :  { %2003 = vmatprep.mubr.msk.f32.mxu1 %vm2348_vm3, %v2349_v13  ;;  %2135 = vmatpush3.bf16.msra.mxu1 %v2134_v57 }
 0xd5f   :  { %2136 = vmatprep.subr.bf16.mxu1 %v2345_v54 }
 0xe30   :  { %v1335_v31 = vpop.f32.mrb[8].mxu1 }
 0xe31   :  { %v1336_v32 = vadd.f32 %v1672_v30, %v1335_v31  ;;  %v1959_v11 = vpop.f32.mrb[9].mxu1 }
 0xe33   :  { %v2710_v36 = vadd.f32 %v1336_v32, %v420_v35 }
 0xe35   :  { %v1341_v37 = vsel %vm1340_vm9, %v2710_v36, 0.0 }
 0xe36   :  { %1342 = vadd.xlane.f32.xlu0 %v1341_v37 }
 0xec3   :  { %v1343_v39 = vpop.xlane.xlu0 %1342 }
 0xec4   :  { %v1344_v40 = vmul.f32 0.03125, %v1343_v39 }
 0xec6   :  { %v1345_v26 = vsub.f32 %v2710_v36, %v1344_v40 }
 0xec8   :  { %v1346_v41 = vmul.f32 %v1345_v26, %v1345_v26 }
 0xeca   :  { %v1347_v42 = vsel %vm1340_vm9, %v1346_v41, 0.0 }
 0xecb   :  { %1348 = vadd.xlane.f32.xlu1 %v1347_v42 }
 0xf58   :  { %v1349_v49 = vpop.xlane.xlu1 %1348 }
 0xf59   :  { %v1350_v44 = vmul.f32 0.03125, %v1349_v49 }
 0xf5b   :  { %v1351_v45 = vadd.f32 1e-05, %v1350_v44 }
 0xf5d   :  { %2339 = vrsqrt.f32 %v1351_v45  ;;  %v55_v45 = vld [vmem:[%s2822_s4 + $0x40] sm:$0xff] }
 0xf67   :  { %v2340_v50 = vpop.eup %2339 }
 0xf68   :  { %v1353_v17 = vmul.f32 %v2340_v50, %v1345_v26  ;;  %v56_v50 = vld [vmem:[%s2822_s4 + $0x58] sm:$0xff] }
 0xf6a   :  { %v1358_v53 = vmul.f32 %v1674_v51, %v1353_v17  ;;  %v2161_v51 = vpack.c.bf16 %v56_v50, %v55_v45  ;;  %v1678_v17 = vld [vmem:[%s2823_s5 + $0x7] ss:$0 sm:$0xff] }
 0xf6c   :  { %v1363_v55 = vadd.f32 %v1675_v52, %v1358_v53 }
 0xf6e   :  { %1969 = vmatmul.mubr.msk.f32.vlgmr.msra.gmra.mrb[20].mxu0 %vm195_vm1, %v1363_v55 }
 0xf6f   :  { %2014 = vmatprep.mubr.msk.f32.mxu0 %vm2348_vm3, %v2349_v13  ;;  %v32_v13 = vld [vmem:[%s2819_s3 + $0x48] sm:$0xff]  ;;  %2159 = vmatpush3.bf16.msra.mxu0 %v2158_v20 }
 0xf70   :  { %v2137_v61 = vpack.c.bf16 %v32_v13, %v31_v58  ;;  %2160 = vmatprep.subr.bf16.mxu0 %v2345_v54 }
 0xf72   :  { %2138 = vmatpush3.bf16.msra.mxu1 %v2137_v61 }
 0xf73   :  { %2139 = vmatprep.subr.bf16.mxu1 %v2345_v54  ;;  %2162 = vmatpush3.bf16.msra.mxu0 %v2161_v51 }
 0xf76   :  { %2141 = vmatpush3.bf16.msra.mxu1 %v2140_v6 }
 0xf77   :  { %2142 = vmatprep.subr.bf16.mxu1 %v2345_v54 }
 0xf7a   :  { %2144 = vmatpush3.bf16.msra.mxu1 %v2143_v62 }
 0xf7b   :  { %2145 = vmatprep.subr.bf16.mxu1 %v2345_v54 }
 0xf7e   :  { %2147 = vmatpush3.bf16.msra.mxu1 %v2146_v4 }
 0xf7f   :  { %2148 = vmatprep.subr.bf16.mxu1 %v2345_v54 }
 0xf82   :  { %2150 = vmatpush3.bf16.msra.mxu1 %v2149_v10 }
 0xf83   :  { %2151 = vmatprep.subr.bf16.mxu1 %v2345_v54 }
 0xf86   :  { %2153 = vmatpush3.bf16.msra.mxu1 %v2152_v3 }
 0xf87   :  { %2154 = vmatprep.subr.bf16.mxu1 %v2345_v54 }
 0xf8a   :  { %2156 = vmatpush3.bf16.msra.mxu1 %v2155_v63 }
0x1041   :  { %v1437_v22 = vpop.f32.mrb[20].mxu0 }
0x1042   :  { %v1438_v23 = vadd.f32 %v1676_v21, %v1437_v22  ;;  %v1970_v24 = vpop.f32.mrb[21].mxu0 }
0x1044   :  { %v1442_v25 = vmul.f32 0.70710677, %v1438_v23  ;;  %v1441_v48 = vmul.f32 0.5, %v1438_v23 }
0x1046   :  { %v1443_v27 = vand.u32 2147483647, %v1442_v25  ;;  %vm1463_vm10 = vcmp.lt.f32.partialorder %v1442_v25, 0.0 }
0x1048   :  { %v1444_v33 = vmul.f32 0.3275911, %v1443_v27  ;;  %v1457_v29 = vsub.f32 0.0, %v1443_v27 }
0x104a   :  { %v1445_v28 = vadd.f32 1.0, %v1444_v33  ;;  %v1458_v31 = vmul.f32 %v1457_v29, %v1443_v27 }
0x104c   :  { %2341 = vrcp.f32 %v1445_v28  ;;  %v1459_v35 = vmul.f32 1.442695, %v1458_v31 }
0x104e   :  { %2343 = vpow2.f32 %v1459_v35 }
0x1056   :  { %v2342_v30 = vpop.eup %2341 }
0x1057   :  { %v1448_v32 = vmul.f32 1.0614054, %v2342_v30 }
0x1058   :  { %v2344_v38 = vpop.eup %2343 }
0x1059   :  { %v1449_v11 = vadd.f32 -1.4531521, %v1448_v32 }
0x105b   :  { %v1450_v37 = vmul.f32 %v2342_v30, %v1449_v11 }
0x105d   :  { %v1451_v54 = vadd.f32 1.4214138, %v1450_v37 }
0x105f   :  { %v1452_v39 = vmul.f32 %v2342_v30, %v1451_v54 }
0x1061   :  { %v1453_v40 = vadd.f32 -0.28449672, %v1452_v39 }
0x1063   :  { %v1454_v26 = vmul.f32 %v2342_v30, %v1453_v40 }
0x1065   :  { %v1455_v41 = vadd.f32 0.2548296, %v1454_v26 }
0x1067   :  { %v1456_v42 = vmul.f32 %v2342_v30, %v1455_v41 }
0x1069   :  { %v1461_v19 = vmul.f32 %v2344_v38, %v1456_v42 }
0x106b   :  { %v1462_v43 = vsub.f32 1.0, %v1461_v19 }
0x106d   :  { %v1464_v46 = vsub.f32 0.0, %v1462_v43 }
0x106f   :  { %v1465_v47 = vsel %vm1463_vm10, %v1464_v46, %v1462_v43 }
0x1070   :  { %v1466_v49 = vadd.f32 1.0, %v1465_v47 }
0x1072   :  { %v1467_v44 = vmul.f32 %v1466_v49, %v1441_v48 }
0x1074   :  { %2004 = vmatmul.mubr.f32.vlgmr.msra.gmra.mrb[10].mxu1 %v1467_v44 }
0x1147   :  { %v1538_v52 = vpop.f32.mrb[10].mxu1 }
0x1148   :  { %v1539_v53 = vadd.f32 %v1678_v17, %v1538_v52  ;;  %v2005_v55 = vpop.f32.mrb[11].mxu1 }
0x114a   :  { %v1542_v34 = vadd.f32 %v1539_v53, %v2710_v36 }
0x114c   :  { %2015 = vmatmul.mubr.msk.f32.vlgmr.msra.gmra.mrb[22].mxu0 %vm195_vm1, %v1542_v34 }
0x121f   :  { %v1616_v57 = vpop.f32.mrb[22].mxu0 }
0x1220   :  { %v1617_v58 = vadd.f32 %v1679_v56, %v1616_v57  ;;  %v2016_v13 = vpop.f32.mrb[23].mxu0 }
0x1222   :  { %1620 = vst [vmem:[%s2825_s6] sm:$0x3] %v1617_v58 }

</bundles_post_ra>
